<compile_context>
chip_gen: v7x
topology: tpu7x:2x2x1
jax: 0.10.0
libtpu: 0.0.40
codegen_flags: <defaults>
</compile_context>

<pallas_src>
import jax
import jax.numpy as jnp
from jax import lax
from jax.experimental import pallas as pl
from jax.experimental.pallas import tpu as pltpu


def _make_kernel(H, W, C, TH, compute_dtype):
    """Kernel factory (static shapes). Grid = (batch, H // TH)."""

    def write_bands(pat_ref, band0, src):
        """im2col: pat[(band0+r)*W + w, dx*C + ci] = src[r, w+dx-1, ci]
        (zero outside the w bounds).  `band0` is a Python int, so every store
        below is a static, wide slab store (dx is folded into the K dim)."""
        rows = src.shape[0]
        n = rows * W
        base = band0 * W
        flat = src.reshape(n, C)
        zf = jnp.zeros_like(flat)
        # w position of every flattened row (used to zero the column halos)
        w_pos = lax.broadcasted_iota(jnp.int32, (rows, W, 1), 1).reshape(n, 1)

        # dx = 1 (center column): plain copy, lane-dense slab store
        pat_ref[pl.ds(base, n), C:2 * C] = flat
        # dx = 0: pat row base+p gets src_flat[p-1]; zero where dest w == 0
        left_src = jnp.where(w_pos == W - 1, zf, flat)
        pat_ref[pl.ds(base + 1, n - 1), 0:C] = left_src[:n - 1, :]
        pat_ref[pl.ds(base, 1), 0:C] = zf[:1, :]
        # dx = 2: pat row base+p gets src_flat[p+1]; zero where dest w == W-1
        right_src = jnp.where(w_pos == 0, zf, flat)
        pat_ref[pl.ds(base, n - 1), 2 * C:3 * C] = right_src[1:, :]
        pat_ref[pl.ds(base + n - 1, 1), 2 * C:3 * C] = zf[:1, :]

    def conv_from_pat(pat_ref, w_ref, n_rows):
        """3 MXU matmuls (one per dy tap), f32 accumulate, ReLU."""
        m = n_rows * W
        acc = jnp.dot(pat_ref[pl.ds(0, m), :], w_ref[0],
                      preferred_element_type=jnp.float32)
        for dy in (1, 2):          # unrolled; taps stream straight from VMEM
            acc = acc + jnp.dot(pat_ref[pl.ds(dy * W, m), :], w_ref[dy],
                                preferred_element_type=jnp.float32)
        return jnp.maximum(acc, 0.0)                              # ReLU

    def kernel(x_ref, w1_ref, w2_ref, out_ref, pat_ref):
        # x_ref  : (H, W, C)       one image (resident across the row-tile axis)
        # w*_ref : (3, 3C, C)      weights, indexed (dy, dx*C + ci, co)
        # out_ref: (TH, W, C)      output row tile
        # pat_ref: ((TH+4)*W, 3C)  im2col scratch, reused by both convs
        j = pl.program_id(1)
        h0 = pl.multiple_of(j * TH, TH)       # first output row of this tile

        # ---- conv1 im2col: bands r = 0..TH+3  <->  x rows h0-2 .. h0+TH+1 ---
        r2 = lax.broadcasted_iota(jnp.int32, (2, 1, 1), 0)
        # top halo (2 rows): zeros on the first tile
        top = x_ref[pl.ds(jnp.maximum(h0 - 2, 0), 2), :, :]
        top = jnp.where(h0 - 2 + r2 >= 0, top, jnp.zeros_like(top))
        write_bands(pat_ref, 0, top)
        # interior (TH rows): always valid — one wide, aligned load
        write_bands(pat_ref, 2, x_ref[pl.ds(h0, TH), :, :])
        # bottom halo (2 rows): zeros on the last tile
        bot = x_ref[pl.ds(jnp.minimum(h0 + TH, H - 2), 2), :, :]
        bot = jnp.where(h0 + TH + r2 < H, bot, jnp.zeros_like(bot))
        write_bands(pat_ref, TH + 2, bot)

        # ---- conv1 + ReLU over TH+2 rows (includes conv2's row halo) --------
        y1 = conv_from_pat(pat_ref, w1_ref, TH + 2).reshape(TH + 2, W, C)
        # rows outside the image are conv2 *padding* rows -> force exact zeros
        g = h0 - 1 + lax.broadcasted_iota(jnp.int32, (TH + 2, 1, 1), 0)
        y1 = jnp.where(jnp.logical_and(g >= 0, g < H), y1,
                       jnp.zeros_like(y1)).astype(compute_dtype)

        # ---- conv2 im2col (reuses pat; ordering enforced by dep through y1) -
        write_bands(pat_ref, 0, y1)

        # ---- conv2 + ReLU + residual, single slab store ----------------------
        acc2 = conv_from_pat(pat_ref, w2_ref, TH).reshape(TH, W, C)
        res = x_ref[pl.ds(h0, TH), :, :].astype(jnp.float32)
        out_ref[...] = (acc2 + res).astype(out_ref.dtype)

    return kernel


def _pick_tile_h(H, W, C, itemsize, tile_h):
    if tile_h is not None:
        if not (2 <= tile_h <= H and H % tile_h == 0):
            raise ValueError("tile_h must divide H and be >= 2")
        return tile_h
    divisors = [d for d in range(2, H + 1) if H % d == 0]
    if not divisors:
        return H
    # smallest divisor with TH*W >= 512 so M fills the 256-wide MXU
    good = [d for d in divisors if d * W >= 512]
    th = good[0] if good else divisors[-1]
    # keep the im2col scratch ((TH+4)*W x 3C) around <= 8 MiB
    while (th + 4) * W * 3 * C * itemsize > 8 * 1024 * 1024:
        smaller = [d for d in divisors if d < th]
        if not smaller:
            break
        th = smaller[-1]
    return th


def identity_residual_block(x_nchw, w1_oihw, w2_oihw, *, tile_h=None,
                            compute_dtype=jnp.float32):
    """Forward pass of IdentityResidualBlock.

    x_nchw  : (N, C, H, W)  float32 (PyTorch layout)
    w*_oihw : (Cout, Cin, 3, 3) float32 (PyTorch Conv2d weight layout)
    compute_dtype: jnp.bfloat16 on v6e/v7x halves HBM/VMEM traffic and feeds
    the MXU at native rate (matmuls still accumulate in f32; residual in f32).
    """
    x = jnp.transpose(x_nchw, (0, 2, 3, 1)).astype(compute_dtype)      # NHWC
    N, H, W, C = x.shape
    assert H >= 2 and W >= 2, "spatial dims must be >= 2"
    # OIHW -> HWIO -> (3, 3*Cin, Cout): dx and ci folded into the K dim
    w1 = jnp.transpose(w1_oihw, (2, 3, 1, 0)).astype(compute_dtype).reshape(3, 3 * C, -1)
    w2 = jnp.transpose(w2_oihw, (2, 3, 1, 0)).astype(compute_dtype).reshape(3, 3 * C, -1)
    assert w1.shape[-1] == C and w2.shape[-1] == C, \
        "residual add requires in_channels == out_channels"

    itemsize = jnp.dtype(compute_dtype).itemsize
    TH = _pick_tile_h(H, W, C, itemsize, tile_h)
    J = H // TH

    kernel = _make_kernel(H, W, C, TH, compute_dtype)

    # VMEM budget: double-buffered blocks + im2col scratch, with headroom.
    block_bytes = (2 * H * W * C * itemsize             # x block (per image)
                   + 2 * 2 * 9 * C * C * itemsize       # w1, w2 blocks
                   + 2 * TH * W * C * 4                 # output tile (f32)
                   + (TH + 4) * W * 3 * C * itemsize)   # im2col scratch
    vmem_limit = int(min(100 * 1024 * 1024,
                         2 * block_bytes + 16 * 1024 * 1024))

    out_nhwc = pl.pallas_call(
        kernel,
        out_shape=jax.ShapeDtypeStruct((N, H, W, C), jnp.float32),
        grid_spec=pltpu.PrefetchScalarGridSpec(
            num_scalar_prefetch=0,
            grid=(N, J),
            in_specs=[
                pl.BlockSpec((None, H, W, C), lambda n, j: (n, 0, 0, 0)),
                pl.BlockSpec((3, 3 * C, C), lambda n, j: (0, 0, 0)),
                pl.BlockSpec((3, 3 * C, C), lambda n, j: (0, 0, 0)),
            ],
            out_specs=pl.BlockSpec((None, TH, W, C), lambda n, j: (n, j, 0, 0)),
            scratch_shapes=[
                pltpu.VMEM(((TH + 4) * W, 3 * C), compute_dtype),   # im2col
            ],
        ),
        compiler_params=pltpu.CompilerParams(
            dimension_semantics=("parallel", "parallel"),   # batch x row tiles
            vmem_limit_bytes=vmem_limit),
    )(x, w1, w2)

    return jnp.transpose(out_nhwc, (0, 3, 1, 2))                    # NCHW


def _reference(x_nchw, w1_oihw, w2_oihw):
    """Pure-JAX reference replicating the PyTorch forward."""
    x = jnp.transpose(x_nchw, (0, 2, 3, 1)).astype(jnp.float32)
    w1 = jnp.transpose(w1_oihw, (2, 3, 1, 0)).astype(jnp.float32)
    w2 = jnp.transpose(w2_oihw, (2, 3, 1, 0)).astype(jnp.float32)

    def conv(a, w):
        return lax.conv_general_dilated(
            a, w, window_strides=(1, 1), padding="SAME",
            dimension_numbers=("NHWC", "HWIO", "NHWC"),
            precision=lax.Precision.HIGHEST)

    y = jnp.maximum(conv(x, w1), 0.0)
    y = jnp.maximum(conv(y, w2), 0.0)
    return jnp.transpose(y + x, (0, 3, 1, 2))


if __name__ == "__main__":
    # small shapes consistent with the module: batch=2, channels=4, spatial=16
    N, C, H, W = 2, 4, 16, 16
    key = jax.random.PRNGKey(0)
    kx, k1, k2 = jax.random.split(key, 3)

    x = jax.random.normal(kx, (N, C, H, W), dtype=jnp.float32)
    # deterministic synthetic Conv2d weights, PyTorch layout (Cout, Cin, 3, 3)
    w1 = 0.1 * jax.random.normal(k1, (C, C, 3, 3), dtype=jnp.float32)
    w2 = 0.1 * jax.random.normal(k2, (C, C, 3, 3), dtype=jnp.float32)

    out = jax.block_until_ready(identity_residual_block(x, w1, w2))
    ref = jax.block_until_ready(_reference(x, w1, w2))

    assert out.shape == (N, C, H, W)
    max_err = float(jnp.max(jnp.abs(out - ref)))
    assert jnp.allclose(out, ref, atol=2e-3, rtol=2e-3), max_err
    print("KERNEL_OK")
</pallas_src>

<mosaic_0001>
module attributes {stable_mosaic.version = 11 : i64} {
  func.func @kernel(%arg0: i32, %arg1: i32, %arg2: memref<1x16x16x4xf32, #tpu.memory_space<vmem>>, %arg3: memref<3x12x4xf32, #tpu.memory_space<vmem>>, %arg4: memref<3x12x4xf32, #tpu.memory_space<vmem>>, %arg5: memref<1x16x16x4xf32, #tpu.memory_space<vmem>>, %arg6: memref<320x12xf32, #tpu.memory_space<vmem>>) attributes {dimension_semantics = [#tpu.dimension_semantics<parallel>, #tpu.dimension_semantics<parallel>], iteration_bounds = array<i64: 2, 1>, scalar_prefetch = 0 : i64, scratch_operands = 1 : i64, tpu.core_type = #tpu.core_type<tc>, window_params = [{transform_indices = @transform_0, window_bounds = array<i64: 1, 16, 16, 4>}, {pipeline_mode = #tpu.pipeline_mode<synchronous>, transform_indices = @transform_1, window_bounds = array<i64: 3, 12, 4>}, {pipeline_mode = #tpu.pipeline_mode<synchronous>, transform_indices = @transform_2, window_bounds = array<i64: 3, 12, 4>}, {transform_indices = @transform_3, window_bounds = array<i64: 1, 16, 16, 4>}]} {
    %c16_i32 = arith.constant 16 : i32
    %0 = arith.muli %arg1, %c16_i32 : i32
    %1 = tpu.assume_multiple %0, 16 : i32
    %2 = tpu.iota {dimensions = array<i32: 0>} : vector<2x1x1xi32>
    %c2_i32 = arith.constant 2 : i32
    %3 = arith.subi %1, %c2_i32 : i32
    %c0_i32 = arith.constant 0 : i32
    %4 = arith.maxsi %3, %c0_i32 : i32
    %c0 = arith.constant 0 : index
    %5 = arith.index_cast %4 : i32 to index
    %c0_0 = arith.constant 0 : index
    %c0_1 = arith.constant 0 : index
    %6 = vector.load %arg2[%c0, %5, %c0_0, %c0_1] : memref<1x16x16x4xf32, #tpu.memory_space<vmem>>, vector<1x2x16x4xf32>
    %7 = vector.shape_cast %6 : vector<1x2x16x4xf32> to vector<2x16x4xf32>
    %c2_i32_2 = arith.constant 2 : i32
    %8 = arith.subi %1, %c2_i32_2 : i32
    %9 = vector.broadcast %8 : i32 to vector<2x1x1xi32>
    %10 = arith.addi %9, %2 : vector<2x1x1xi32>
    %c0_i32_3 = arith.constant 0 : i32
    %11 = vector.broadcast %c0_i32_3 : i32 to vector<2x1x1xi32>
    %12 = arith.cmpi sge, %10, %11 : vector<2x1x1xi32>
    %cst = arith.constant 0.000000e+00 : f32
    %13 = vector.broadcast %cst : f32 to vector<2x16x4xf32>
    %14 = vector.shape_cast %12 : vector<2x1x1xi1> to vector<2x1x1xi1>
    %15 = vector.broadcast %14 : vector<2x1x1xi1> to vector<2x16x4xi1>
    %16 = arith.select %15, %7, %13 : vector<2x16x4xi1>, vector<2x16x4xf32>
    %17 = vector.shape_cast %16 : vector<2x16x4xf32> to vector<32x4xf32>
    %cst_4 = arith.constant 0.000000e+00 : f32
    %18 = vector.broadcast %cst_4 : f32 to vector<32x4xf32>
    %19 = tpu.iota {dimensions = array<i32: 1>} : vector<2x16x1xi32>
    %20 = vector.shape_cast %19 : vector<2x16x1xi32> to vector<32x1xi32>
    %c0_5 = arith.constant 0 : index
    %c4 = arith.constant 4 : index
    %21 = vector.load %arg6[%c0_5, %c4] : memref<320x12xf32, #tpu.memory_space<vmem>>, vector<32x4xf32>
    tpu.vector_store %arg6[%c0_5, %c4], %17 {strides = array<i32>} : memref<320x12xf32, #tpu.memory_space<vmem>>, vector<32x4xf32>,
    %c15_i32 = arith.constant 15 : i32
    %22 = vector.broadcast %c15_i32 : i32 to vector<32x1xi32>
    %23 = arith.cmpi eq, %20, %22 : vector<32x1xi32>
    %24 = vector.shape_cast %23 : vector<32x1xi1> to vector<32x1xi1>
    %25 = vector.broadcast %24 : vector<32x1xi1> to vector<32x4xi1>
    %26 = arith.select %25, %18, %17 : vector<32x4xi1>, vector<32x4xf32>
    %27 = vector.extract_strided_slice %26 {offsets = [0, 0], sizes = [31, 4], strides = [1, 1]} : vector<32x4xf32> to vector<31x4xf32>
    %c1 = arith.constant 1 : index
    %c0_6 = arith.constant 0 : index
    %28 = vector.load %arg6[%c1, %c0_6] : memref<320x12xf32, #tpu.memory_space<vmem>>, vector<31x4xf32>
    tpu.vector_store %arg6[%c1, %c0_6], %27 {strides = array<i32>} : memref<320x12xf32, #tpu.memory_space<vmem>>, vector<31x4xf32>,
    %29 = vector.extract_strided_slice %18 {offsets = [0, 0], sizes = [1, 4], strides = [1, 1]} : vector<32x4xf32> to vector<1x4xf32>
    %c0_7 = arith.constant 0 : index
    %c0_8 = arith.constant 0 : index
    %30 = vector.load %arg6[%c0_7, %c0_8] : memref<320x12xf32, #tpu.memory_space<vmem>>, vector<1x4xf32>
    tpu.vector_store %arg6[%c0_7, %c0_8], %29 {strides = array<i32>} : memref<320x12xf32, #tpu.memory_space<vmem>>, vector<1x4xf32>,
    %c0_i32_9 = arith.constant 0 : i32
    %31 = vector.broadcast %c0_i32_9 : i32 to vector<32x1xi32>
    %32 = arith.cmpi eq, %20, %31 : vector<32x1xi32>
    %33 = vector.shape_cast %32 : vector<32x1xi1> to vector<32x1xi1>
    %34 = vector.broadcast %33 : vector<32x1xi1> to vector<32x4xi1>
    %35 = arith.select %34, %18, %17 : vector<32x4xi1>, vector<32x4xf32>
    %36 = vector.extract_strided_slice %35 {offsets = [1, 0], sizes = [31, 4], strides = [1, 1]} : vector<32x4xf32> to vector<31x4xf32>
    %c0_10 = arith.constant 0 : index
    %c8 = arith.constant 8 : index
    %37 = vector.load %arg6[%c0_10, %c8] : memref<320x12xf32, #tpu.memory_space<vmem>>, vector<31x4xf32>
    tpu.vector_store %arg6[%c0_10, %c8], %36 {strides = array<i32>} : memref<320x12xf32, #tpu.memory_space<vmem>>, vector<31x4xf32>,
    %38 = vector.extract_strided_slice %18 {offsets = [0, 0], sizes = [1, 4], strides = [1, 1]} : vector<32x4xf32> to vector<1x4xf32>
    %c31 = arith.constant 31 : index
    %c8_11 = arith.constant 8 : index
    %39 = vector.load %arg6[%c31, %c8_11] : memref<320x12xf32, #tpu.memory_space<vmem>>, vector<1x4xf32>
    tpu.vector_store %arg6[%c31, %c8_11], %38 {strides = array<i32>} : memref<320x12xf32, #tpu.memory_space<vmem>>, vector<1x4xf32>,
    %c0_12 = arith.constant 0 : index
    %40 = arith.index_cast %1 : i32 to index
    %c0_13 = arith.constant 0 : index
    %c0_14 = arith.constant 0 : index
    %41 = vector.load %arg2[%c0_12, %40, %c0_13, %c0_14] : memref<1x16x16x4xf32, #tpu.memory_space<vmem>>, vector<1x16x16x4xf32>
    %42 = vector.shape_cast %41 : vector<1x16x16x4xf32> to vector<16x16x4xf32>
    %43 = vector.shape_cast %42 : vector<16x16x4xf32> to vector<256x4xf32>
    %cst_15 = arith.constant 0.000000e+00 : f32
    %44 = vector.broadcast %cst_15 : f32 to vector<256x4xf32>
    %45 = tpu.iota {dimensions = array<i32: 1>} : vector<16x16x1xi32>
    %46 = vector.shape_cast %45 : vector<16x16x1xi32> to vector<256x1xi32>
    %c32 = arith.constant 32 : index
    %c4_16 = arith.constant 4 : index
    %47 = vector.load %arg6[%c32, %c4_16] : memref<320x12xf32, #tpu.memory_space<vmem>>, vector<256x4xf32>
    tpu.vector_store %arg6[%c32, %c4_16], %43 {strides = array<i32>} : memref<320x12xf32, #tpu.memory_space<vmem>>, vector<256x4xf32>,
    %c15_i32_17 = arith.constant 15 : i32
    %48 = vector.broadcast %c15_i32_17 : i32 to vector<256x1xi32>
    %49 = arith.cmpi eq, %46, %48 : vector<256x1xi32>
    %50 = vector.shape_cast %49 : vector<256x1xi1> to vector<256x1xi1>
    %51 = vector.broadcast %50 : vector<256x1xi1> to vector<256x4xi1>
    %52 = arith.select %51, %44, %43 : vector<256x4xi1>, vector<256x4xf32>
    %53 = vector.extract_strided_slice %52 {offsets = [0, 0], sizes = [255, 4], strides = [1, 1]} : vector<256x4xf32> to vector<255x4xf32>
    %c33 = arith.constant 33 : index
    %c0_18 = arith.constant 0 : index
    %54 = vector.load %arg6[%c33, %c0_18] : memref<320x12xf32, #tpu.memory_space<vmem>>, vector<255x4xf32>
    tpu.vector_store %arg6[%c33, %c0_18], %53 {strides = array<i32>} : memref<320x12xf32, #tpu.memory_space<vmem>>, vector<255x4xf32>,
    %55 = vector.extract_strided_slice %44 {offsets = [0, 0], sizes = [1, 4], strides = [1, 1]} : vector<256x4xf32> to vector<1x4xf32>
    %c32_19 = arith.constant 32 : index
    %c0_20 = arith.constant 0 : index
    %56 = vector.load %arg6[%c32_19, %c0_20] : memref<320x12xf32, #tpu.memory_space<vmem>>, vector<1x4xf32>
    tpu.vector_store %arg6[%c32_19, %c0_20], %55 {strides = array<i32>} : memref<320x12xf32, #tpu.memory_space<vmem>>, vector<1x4xf32>,
    %c0_i32_21 = arith.constant 0 : i32
    %57 = vector.broadcast %c0_i32_21 : i32 to vector<256x1xi32>
    %58 = arith.cmpi eq, %46, %57 : vector<256x1xi32>
    %59 = vector.shape_cast %58 : vector<256x1xi1> to vector<256x1xi1>
    %60 = vector.broadcast %59 : vector<256x1xi1> to vector<256x4xi1>
    %61 = arith.select %60, %44, %43 : vector<256x4xi1>, vector<256x4xf32>
    %62 = vector.extract_strided_slice %61 {offsets = [1, 0], sizes = [255, 4], strides = [1, 1]} : vector<256x4xf32> to vector<255x4xf32>
    %c32_22 = arith.constant 32 : index
    %c8_23 = arith.constant 8 : index
    %63 = vector.load %arg6[%c32_22, %c8_23] : memref<320x12xf32, #tpu.memory_space<vmem>>, vector<255x4xf32>
    tpu.vector_store %arg6[%c32_22, %c8_23], %62 {strides = array<i32>} : memref<320x12xf32, #tpu.memory_space<vmem>>, vector<255x4xf32>,
    %64 = vector.extract_strided_slice %44 {offsets = [0, 0], sizes = [1, 4], strides = [1, 1]} : vector<256x4xf32> to vector<1x4xf32>
    %c287 = arith.constant 287 : index
    %c8_24 = arith.constant 8 : index
    %65 = vector.load %arg6[%c287, %c8_24] : memref<320x12xf32, #tpu.memory_space<vmem>>, vector<1x4xf32>
    tpu.vector_store %arg6[%c287, %c8_24], %64 {strides = array<i32>} : memref<320x12xf32, #tpu.memory_space<vmem>>, vector<1x4xf32>,
    %c16_i32_25 = arith.constant 16 : i32
    %66 = arith.addi %1, %c16_i32_25 : i32
    %c14_i32 = arith.constant 14 : i32
    %67 = arith.minsi %66, %c14_i32 : i32
    %c0_26 = arith.constant 0 : index
    %68 = arith.index_cast %67 : i32 to index
    %c0_27 = arith.constant 0 : index
    %c0_28 = arith.constant 0 : index
    %69 = vector.load %arg2[%c0_26, %68, %c0_27, %c0_28] : memref<1x16x16x4xf32, #tpu.memory_space<vmem>>, vector<1x2x16x4xf32>
    %70 = vector.shape_cast %69 : vector<1x2x16x4xf32> to vector<2x16x4xf32>
    %c16_i32_29 = arith.constant 16 : i32
    %71 = arith.addi %1, %c16_i32_29 : i32
    %72 = vector.broadcast %71 : i32 to vector<2x1x1xi32>
    %73 = arith.addi %72, %2 : vector<2x1x1xi32>
    %c16_i32_30 = arith.constant 16 : i32
    %74 = vector.broadcast %c16_i32_30 : i32 to vector<2x1x1xi32>
    %75 = arith.cmpi slt, %73, %74 : vector<2x1x1xi32>
    %cst_31 = arith.constant 0.000000e+00 : f32
    %76 = vector.broadcast %cst_31 : f32 to vector<2x16x4xf32>
    %77 = vector.shape_cast %75 : vector<2x1x1xi1> to vector<2x1x1xi1>
    %78 = vector.broadcast %77 : vector<2x1x1xi1> to vector<2x16x4xi1>
    %79 = arith.select %78, %70, %76 : vector<2x16x4xi1>, vector<2x16x4xf32>
    %80 = vector.shape_cast %79 : vector<2x16x4xf32> to vector<32x4xf32>
    %cst_32 = arith.constant 0.000000e+00 : f32
    %81 = vector.broadcast %cst_32 : f32 to vector<32x4xf32>
    %82 = tpu.iota {dimensions = array<i32: 1>} : vector<2x16x1xi32>
    %83 = vector.shape_cast %82 : vector<2x16x1xi32> to vector<32x1xi32>
    %c288 = arith.constant 288 : index
    %c4_33 = arith.constant 4 : index
    %84 = vector.load %arg6[%c288, %c4_33] : memref<320x12xf32, #tpu.memory_space<vmem>>, vector<32x4xf32>
    tpu.vector_store %arg6[%c288, %c4_33], %80 {strides = array<i32>} : memref<320x12xf32, #tpu.memory_space<vmem>>, vector<32x4xf32>,
    %c15_i32_34 = arith.constant 15 : i32
    %85 = vector.broadcast %c15_i32_34 : i32 to vector<32x1xi32>
    %86 = arith.cmpi eq, %83, %85 : vector<32x1xi32>
    %87 = vector.shape_cast %86 : vector<32x1xi1> to vector<32x1xi1>
    %88 = vector.broadcast %87 : vector<32x1xi1> to vector<32x4xi1>
    %89 = arith.select %88, %81, %80 : vector<32x4xi1>, vector<32x4xf32>
    %90 = vector.extract_strided_slice %89 {offsets = [0, 0], sizes = [31, 4], strides = [1, 1]} : vector<32x4xf32> to vector<31x4xf32>
    %c289 = arith.constant 289 : index
    %c0_35 = arith.constant 0 : index
    %91 = vector.load %arg6[%c289, %c0_35] : memref<320x12xf32, #tpu.memory_space<vmem>>, vector<31x4xf32>
    tpu.vector_store %arg6[%c289, %c0_35], %90 {strides = array<i32>} : memref<320x12xf32, #tpu.memory_space<vmem>>, vector<31x4xf32>,
    %92 = vector.extract_strided_slice %81 {offsets = [0, 0], sizes = [1, 4], strides = [1, 1]} : vector<32x4xf32> to vector<1x4xf32>
    %c288_36 = arith.constant 288 : index
    %c0_37 = arith.constant 0 : index
    %93 = vector.load %arg6[%c288_36, %c0_37] : memref<320x12xf32, #tpu.memory_space<vmem>>, vector<1x4xf32>
    tpu.vector_store %arg6[%c288_36, %c0_37], %92 {strides = array<i32>} : memref<320x12xf32, #tpu.memory_space<vmem>>, vector<1x4xf32>,
    %c0_i32_38 = arith.constant 0 : i32
    %94 = vector.broadcast %c0_i32_38 : i32 to vector<32x1xi32>
    %95 = arith.cmpi eq, %83, %94 : vector<32x1xi32>
    %96 = vector.shape_cast %95 : vector<32x1xi1> to vector<32x1xi1>
    %97 = vector.broadcast %96 : vector<32x1xi1> to vector<32x4xi1>
    %98 = arith.select %97, %81, %80 : vector<32x4xi1>, vector<32x4xf32>
    %99 = vector.extract_strided_slice %98 {offsets = [1, 0], sizes = [31, 4], strides = [1, 1]} : vector<32x4xf32> to vector<31x4xf32>
    %c288_39 = arith.constant 288 : index
    %c8_40 = arith.constant 8 : index
    %100 = vector.load %arg6[%c288_39, %c8_40] : memref<320x12xf32, #tpu.memory_space<vmem>>, vector<31x4xf32>
    tpu.vector_store %arg6[%c288_39, %c8_40], %99 {strides = array<i32>} : memref<320x12xf32, #tpu.memory_space<vmem>>, vector<31x4xf32>,
    %101 = vector.extract_strided_slice %81 {offsets = [0, 0], sizes = [1, 4], strides = [1, 1]} : vector<32x4xf32> to vector<1x4xf32>
    %c319 = arith.constant 319 : index
    %c8_41 = arith.constant 8 : index
    %102 = vector.load %arg6[%c319, %c8_41] : memref<320x12xf32, #tpu.memory_space<vmem>>, vector<1x4xf32>
    tpu.vector_store %arg6[%c319, %c8_41], %101 {strides = array<i32>} : memref<320x12xf32, #tpu.memory_space<vmem>>, vector<1x4xf32>,
    %c0_42 = arith.constant 0 : index
    %c0_43 = arith.constant 0 : index
    %103 = vector.load %arg6[%c0_42, %c0_43] : memref<320x12xf32, #tpu.memory_space<vmem>>, vector<288x12xf32>
    %c0_44 = arith.constant 0 : index
    %c0_45 = arith.constant 0 : index
    %c0_46 = arith.constant 0 : index
    %104 = vector.load %arg3[%c0_44, %c0_45, %c0_46] : memref<3x12x4xf32, #tpu.memory_space<vmem>>, vector<1x12x4xf32>
    %105 = vector.shape_cast %104 : vector<1x12x4xf32> to vector<12x4xf32>
    %cst_47 = arith.constant dense<0.000000e+00> : vector<288x4xf32>
    %106 = tpu.matmul %103, %105, %cst_47 {dimension_numbers = #tpu.dot_dimension_numbers<[1], [0], [0], [1], [0, 0, 1, 1], [], []>} : vector<288x12xf32>, vector<12x4xf32>, vector<288x4xf32> -> vector<288x4xf32>
    %c16 = arith.constant 16 : index
    %c0_48 = arith.constant 0 : index
    %107 = vector.load %arg6[%c16, %c0_48] : memref<320x12xf32, #tpu.memory_space<vmem>>, vector<288x12xf32>
    %c1_49 = arith.constant 1 : index
    %c0_50 = arith.constant 0 : index
    %c0_51 = arith.constant 0 : index
    %108 = vector.load %arg3[%c1_49, %c0_50, %c0_51] : memref<3x12x4xf32, #tpu.memory_space<vmem>>, vector<1x12x4xf32>
    %109 = vector.shape_cast %108 : vector<1x12x4xf32> to vector<12x4xf32>
    %cst_52 = arith.constant dense<0.000000e+00> : vector<288x4xf32>
    %110 = tpu.matmul %107, %109, %cst_52 {dimension_numbers = #tpu.dot_dimension_numbers<[1], [0], [0], [1], [0, 0, 1, 1], [], []>} : vector<288x12xf32>, vector<12x4xf32>, vector<288x4xf32> -> vector<288x4xf32>
    %111 = arith.addf %106, %110 : vector<288x4xf32>
    %c32_53 = arith.constant 32 : index
    %c0_54 = arith.constant 0 : index
    %112 = vector.load %arg6[%c32_53, %c0_54] : memref<320x12xf32, #tpu.memory_space<vmem>>, vector<288x12xf32>
    %c2 = arith.constant 2 : index
    %c0_55 = arith.constant 0 : index
    %c0_56 = arith.constant 0 : index
    %113 = vector.load %arg3[%c2, %c0_55, %c0_56] : memref<3x12x4xf32, #tpu.memory_space<vmem>>, vector<1x12x4xf32>
    %114 = vector.shape_cast %113 : vector<1x12x4xf32> to vector<12x4xf32>
    %cst_57 = arith.constant dense<0.000000e+00> : vector<288x4xf32>
    %115 = tpu.matmul %112, %114, %cst_57 {dimension_numbers = #tpu.dot_dimension_numbers<[1], [0], [0], [1], [0, 0, 1, 1], [], []>} : vector<288x12xf32>, vector<12x4xf32>, vector<288x4xf32> -> vector<288x4xf32>
    %116 = arith.addf %111, %115 : vector<288x4xf32>
    %cst_58 = arith.constant 0.000000e+00 : f32
    %117 = vector.broadcast %cst_58 : f32 to vector<288x4xf32>
    %118 = arith.maximumf %116, %117 : vector<288x4xf32>
    %119 = vector.shape_cast %118 : vector<288x4xf32> to vector<18x16x4xf32>
    %c1_i32 = arith.constant 1 : i32
    %120 = arith.subi %1, %c1_i32 : i32
    %121 = tpu.iota {dimensions = array<i32: 0>} : vector<18x1x1xi32>
    %122 = vector.broadcast %120 : i32 to vector<18x1x1xi32>
    %123 = arith.addi %122, %121 : vector<18x1x1xi32>
    %c0_i32_59 = arith.constant 0 : i32
    %124 = vector.broadcast %c0_i32_59 : i32 to vector<18x1x1xi32>
    %125 = arith.cmpi sge, %123, %124 : vector<18x1x1xi32>
    %c16_i32_60 = arith.constant 16 : i32
    %126 = vector.broadcast %c16_i32_60 : i32 to vector<18x1x1xi32>
    %127 = arith.cmpi slt, %123, %126 : vector<18x1x1xi32>
    %128 = arith.andi %125, %127 : vector<18x1x1xi1>
    %cst_61 = arith.constant 0.000000e+00 : f32
    %129 = vector.broadcast %cst_61 : f32 to vector<18x16x4xf32>
    %130 = vector.shape_cast %128 : vector<18x1x1xi1> to vector<18x1x1xi1>
    %131 = vector.broadcast %130 : vector<18x1x1xi1> to vector<18x16x4xi1>
    %132 = arith.select %131, %119, %129 : vector<18x16x4xi1>, vector<18x16x4xf32>
    %133 = vector.shape_cast %132 : vector<18x16x4xf32> to vector<288x4xf32>
    %cst_62 = arith.constant 0.000000e+00 : f32
    %134 = vector.broadcast %cst_62 : f32 to vector<288x4xf32>
    %135 = tpu.iota {dimensions = array<i32: 1>} : vector<18x16x1xi32>
    %136 = vector.shape_cast %135 : vector<18x16x1xi32> to vector<288x1xi32>
    %c0_63 = arith.constant 0 : index
    %c4_64 = arith.constant 4 : index
    %137 = vector.load %arg6[%c0_63, %c4_64] : memref<320x12xf32, #tpu.memory_space<vmem>>, vector<288x4xf32>
    tpu.vector_store %arg6[%c0_63, %c4_64], %133 {strides = array<i32>} : memref<320x12xf32, #tpu.memory_space<vmem>>, vector<288x4xf32>,
    %c15_i32_65 = arith.constant 15 : i32
    %138 = vector.broadcast %c15_i32_65 : i32 to vector<288x1xi32>
    %139 = arith.cmpi eq, %136, %138 : vector<288x1xi32>
    %140 = vector.shape_cast %139 : vector<288x1xi1> to vector<288x1xi1>
    %141 = vector.broadcast %140 : vector<288x1xi1> to vector<288x4xi1>
    %142 = arith.select %141, %134, %133 : vector<288x4xi1>, vector<288x4xf32>
    %143 = vector.extract_strided_slice %142 {offsets = [0, 0], sizes = [287, 4], strides = [1, 1]} : vector<288x4xf32> to vector<287x4xf32>
    %c1_66 = arith.constant 1 : index
    %c0_67 = arith.constant 0 : index
    %144 = vector.load %arg6[%c1_66, %c0_67] : memref<320x12xf32, #tpu.memory_space<vmem>>, vector<287x4xf32>
    tpu.vector_store %arg6[%c1_66, %c0_67], %143 {strides = array<i32>} : memref<320x12xf32, #tpu.memory_space<vmem>>, vector<287x4xf32>,
    %145 = vector.extract_strided_slice %134 {offsets = [0, 0], sizes = [1, 4], strides = [1, 1]} : vector<288x4xf32> to vector<1x4xf32>
    %c0_68 = arith.constant 0 : index
    %c0_69 = arith.constant 0 : index
    %146 = vector.load %arg6[%c0_68, %c0_69] : memref<320x12xf32, #tpu.memory_space<vmem>>, vector<1x4xf32>
    tpu.vector_store %arg6[%c0_68, %c0_69], %145 {strides = array<i32>} : memref<320x12xf32, #tpu.memory_space<vmem>>, vector<1x4xf32>,
    %c0_i32_70 = arith.constant 0 : i32
    %147 = vector.broadcast %c0_i32_70 : i32 to vector<288x1xi32>
    %148 = arith.cmpi eq, %136, %147 : vector<288x1xi32>
    %149 = vector.shape_cast %148 : vector<288x1xi1> to vector<288x1xi1>
    %150 = vector.broadcast %149 : vector<288x1xi1> to vector<288x4xi1>
    %151 = arith.select %150, %134, %133 : vector<288x4xi1>, vector<288x4xf32>
    %152 = vector.extract_strided_slice %151 {offsets = [1, 0], sizes = [287, 4], strides = [1, 1]} : vector<288x4xf32> to vector<287x4xf32>
    %c0_71 = arith.constant 0 : index
    %c8_72 = arith.constant 8 : index
    %153 = vector.load %arg6[%c0_71, %c8_72] : memref<320x12xf32, #tpu.memory_space<vmem>>, vector<287x4xf32>
    tpu.vector_store %arg6[%c0_71, %c8_72], %152 {strides = array<i32>} : memref<320x12xf32, #tpu.memory_space<vmem>>, vector<287x4xf32>,
    %154 = vector.extract_strided_slice %134 {offsets = [0, 0], sizes = [1, 4], strides = [1, 1]} : vector<288x4xf32> to vector<1x4xf32>
    %c287_73 = arith.constant 287 : index
    %c8_74 = arith.constant 8 : index
    %155 = vector.load %arg6[%c287_73, %c8_74] : memref<320x12xf32, #tpu.memory_space<vmem>>, vector<1x4xf32>
    tpu.vector_store %arg6[%c287_73, %c8_74], %154 {strides = array<i32>} : memref<320x12xf32, #tpu.memory_space<vmem>>, vector<1x4xf32>,
    %c0_75 = arith.constant 0 : index
    %c0_76 = arith.constant 0 : index
    %156 = vector.load %arg6[%c0_75, %c0_76] : memref<320x12xf32, #tpu.memory_space<vmem>>, vector<256x12xf32>
    %c0_77 = arith.constant 0 : index
    %c0_78 = arith.constant 0 : index
    %c0_79 = arith.constant 0 : index
    %157 = vector.load %arg4[%c0_77, %c0_78, %c0_79] : memref<3x12x4xf32, #tpu.memory_space<vmem>>, vector<1x12x4xf32>
    %158 = vector.shape_cast %157 : vector<1x12x4xf32> to vector<12x4xf32>
    %cst_80 = arith.constant dense<0.000000e+00> : vector<256x4xf32>
    %159 = tpu.matmul %156, %158, %cst_80 {dimension_numbers = #tpu.dot_dimension_numbers<[1], [0], [0], [1], [0, 0, 1, 1], [], []>} : vector<256x12xf32>, vector<12x4xf32>, vector<256x4xf32> -> vector<256x4xf32>
    %c16_81 = arith.constant 16 : index
    %c0_82 = arith.constant 0 : index
    %160 = vector.load %arg6[%c16_81, %c0_82] : memref<320x12xf32, #tpu.memory_space<vmem>>, vector<256x12xf32>
    %c1_83 = arith.constant 1 : index
    %c0_84 = arith.constant 0 : index
    %c0_85 = arith.constant 0 : index
    %161 = vector.load %arg4[%c1_83, %c0_84, %c0_85] : memref<3x12x4xf32, #tpu.memory_space<vmem>>, vector<1x12x4xf32>
    %162 = vector.shape_cast %161 : vector<1x12x4xf32> to vector<12x4xf32>
    %cst_86 = arith.constant dense<0.000000e+00> : vector<256x4xf32>
    %163 = tpu.matmul %160, %162, %cst_86 {dimension_numbers = #tpu.dot_dimension_numbers<[1], [0], [0], [1], [0, 0, 1, 1], [], []>} : vector<256x12xf32>, vector<12x4xf32>, vector<256x4xf32> -> vector<256x4xf32>
    %164 = arith.addf %159, %163 : vector<256x4xf32>
    %c32_87 = arith.constant 32 : index
    %c0_88 = arith.constant 0 : index
    %165 = vector.load %arg6[%c32_87, %c0_88] : memref<320x12xf32, #tpu.memory_space<vmem>>, vector<256x12xf32>
    %c2_89 = arith.constant 2 : index
    %c0_90 = arith.constant 0 : index
    %c0_91 = arith.constant 0 : index
    %166 = vector.load %arg4[%c2_89, %c0_90, %c0_91] : memref<3x12x4xf32, #tpu.memory_space<vmem>>, vector<1x12x4xf32>
    %167 = vector.shape_cast %166 : vector<1x12x4xf32> to vector<12x4xf32>
    %cst_92 = arith.constant dense<0.000000e+00> : vector<256x4xf32>
    %168 = tpu.matmul %165, %167, %cst_92 {dimension_numbers = #tpu.dot_dimension_numbers<[1], [0], [0], [1], [0, 0, 1, 1], [], []>} : vector<256x12xf32>, vector<12x4xf32>, vector<256x4xf32> -> vector<256x4xf32>
    %169 = arith.addf %164, %168 : vector<256x4xf32>
    %cst_93 = arith.constant 0.000000e+00 : f32
    %170 = vector.broadcast %cst_93 : f32 to vector<256x4xf32>
    %171 = arith.maximumf %169, %170 : vector<256x4xf32>
    %172 = vector.shape_cast %171 : vector<256x4xf32> to vector<16x16x4xf32>
    %c0_94 = arith.constant 0 : index
    %173 = arith.index_cast %1 : i32 to index
    %c0_95 = arith.constant 0 : index
    %c0_96 = arith.constant 0 : index
    %174 = vector.load %arg2[%c0_94, %173, %c0_95, %c0_96] : memref<1x16x16x4xf32, #tpu.memory_space<vmem>>, vector<1x16x16x4xf32>
    %175 = vector.shape_cast %174 : vector<1x16x16x4xf32> to vector<16x16x4xf32>
    %176 = arith.addf %172, %175 : vector<16x16x4xf32>
    %c0_97 = arith.constant 0 : index
    %c0_98 = arith.constant 0 : index
    %c0_99 = arith.constant 0 : index
    %c0_100 = arith.constant 0 : index
    %177 = vector.load %arg5[%c0_97, %c0_98, %c0_99, %c0_100] : memref<1x16x16x4xf32, #tpu.memory_space<vmem>>, vector<1x16x16x4xf32>
    %178 = vector.shape_cast %177 : vector<1x16x16x4xf32> to vector<16x16x4xf32>
    %179 = vector.shape_cast %176 : vector<16x16x4xf32> to vector<1x16x16x4xf32>
    tpu.vector_store %arg5[%c0_97, %c0_98, %c0_99, %c0_100], %179 {strides = array<i32>} : memref<1x16x16x4xf32, #tpu.memory_space<vmem>>, vector<1x16x16x4xf32>,
    return
  }
  func.func @transform_0(%arg0: i32, %arg1: i32) -> (i32, i32, i32, i32) {
    %c0_i32 = arith.constant 0 : i32
    %c0_i32_0 = arith.constant 0 : i32
    %c0_i32_1 = arith.constant 0 : i32
    %c0_i32_2 = arith.constant 0 : i32
    return %arg0, %c0_i32, %c0_i32_0, %c0_i32_1 : i32, i32, i32, i32
  }
  func.func @transform_1(%arg0: i32, %arg1: i32) -> (i32, i32, i32) {
    %c0_i32 = arith.constant 0 : i32
    %c0_i32_0 = arith.constant 0 : i32
    %c0_i32_1 = arith.constant 0 : i32
    %c0_i32_2 = arith.constant 0 : i32
    return %c0_i32, %c0_i32_0, %c0_i32_1 : i32, i32, i32
  }
  func.func @transform_2(%arg0: i32, %arg1: i32) -> (i32, i32, i32) {
    %c0_i32 = arith.constant 0 : i32
    %c0_i32_0 = arith.constant 0 : i32
    %c0_i32_1 = arith.constant 0 : i32
    %c0_i32_2 = arith.constant 0 : i32
    return %c0_i32, %c0_i32_0, %c0_i32_1 : i32, i32, i32
  }
  func.func @transform_3(%arg0: i32, %arg1: i32) -> (i32, i32, i32, i32) {
    %c0_i32 = arith.constant 0 : i32
    %c0_i32_0 = arith.constant 0 : i32
    %c0_i32_1 = arith.constant 0 : i32
    return %arg0, %arg1, %c0_i32, %c0_i32_0 : i32, i32, i32, i32
  }
}

</mosaic_0001>

<bundles_post_ra>
// kernel: tpu_custom_call.1
= control target key start
LH: loop header
LB: loop body
LE: loop exit
PB: predicated region body
PF: predicated region fallthrough
CT: control target
= control target key end

     0   :  { %s4830_s12 = smov 0   ;;  %s4832_s13 = smov 0   ;;  %s6508_s0 = inlined_call_operand.vmem [shape: f32[2,16,16,4], index: 0, kind: input, shape index: {}]   ;;  %s6509_s1 = inlined_call_operand.vmem [shape: f32[3,12,4], index: 1, kind: input, shape index: {}]   ;;  %s6510_s2 = inlined_call_operand.vmem [shape: f32[3,12,4], index: 2, kind: input, shape index: {}]   ;;  %s6511_s3 = inlined_call_operand.vmem [shape: f32[2,16,16,4], index: 3, kind: output, shape index: {}]  }
   0x1   :  { %s4834_s14 = smov 0  }
   0x2 LB: > { %s25_s15 = sadd.s32 1, %s4800_s13  ;;  %p3771_p0 = scmp.ge.s32.totalorder %s4804_s14, 1  ;;  %s4804_s14 = sphi %s4834_s14, %s13_s14   ;;  %s4800_s13 = sphi %s4832_s13, %s6515_s13   ;;  %s4796_s12 = sphi %s4830_s12, %s6514_s12  }
   0x3   : > { %p27_p1 = scmp.ge.s32.totalorder %s25_s15, 2  ;;  %p151_p2 = scmp.lt.s32.totalorder %s4804_s14, 3 }
   0x5   : > { %s6517_s15 = smov (%p27_p1, %s25_s15), 0  ;;  %p152_p3 = pnand %p3771_p0, %p151_p2 }
   0x6   : > { %v3780_v0 = vld [vmem:[%s6509_s1 + $0x10] sm:$0xff] (!%p152_p3)  ;;  %p180_p4 = scmp.lt.s32.totalorder (!%p152_p3), %s4796_s12, 1  ;;  %v3781_v1 = vld [vmem:[%s6509_s1 + $0x18] sm:$0xf] (!%p152_p3)  ;;  %v218_v2 = vlaneseq (!%p152_p3)  ;;  %v4806_v3 = vmov (!%p152_p3), 0.0   ;;  %s4807_s20 = smov (!%p152_p3), 8  }
   0x7   : > { %155 = sbr.rel (%p152_p3) target bundleno = 1158 (0x486), region = 32  ;;  %4748 = vrot.lane.b32.xlu1 (!%p152_p3), %v4806_v3, %s4807_s20  ;;  %s4808_s21 = smov (!%p152_p3), 4   ;;  %vm973_vm0 = vcmask (!%p152_p3), 1043456   ;;  %v4548_v4 = vpack.c.bf16 (!%p152_p3), %v3781_v1, %v3780_v0  ;;  %vm4809_vm1 = vmmov (!%p152_p3), 1   ;;  %v857_v30 = vld [vmem:[%s6509_s1] sm:$0xff] (!%p152_p3)  ;;  %vm237_vm4 = vcmask (!%p152_p3), 64544  }
   0x8   : > { %4743 = vrot.lane.b32.xlu0 (!%p152_p3), %v4806_v3, %s4808_s21  ;;  %vm4860_vm2 = vmpackc.low (!%p152_p3), %vm973_vm0, %vm4809_vm1  ;;  %v4876_v6 = vshrl.u32 (!%p152_p3), %v218_v2, 7  ;;  %v858_v31 = vld [vmem:[%s6509_s1 + $0x8] sm:$0xf] (!%p152_p3)  ;;  %vm252_vm5 = vcmask (!%p152_p3), 31744   ;;  %vm256_vm6 = vcmask (!%p152_p3), 30720   ;;  %vm288_vm7 = vcmask (!%p152_p3), 97344  }
   0x9   : > { %4550 = vmatprep.subr.msk.bf16.mxu0 (!%p152_p3), %vm4860_vm2, %v4548_v4  ;;  %4584 = vmatprep.subr.msk.bf16.mxu1 (!%p152_p3), %vm4860_vm2, %v4548_v4  ;;  %v5011_v32 = vpack.c.bf16 (!%p152_p3), %v858_v31, %v857_v30  ;;  %vm292_vm8 = vcmask (!%p152_p3), 90176   ;;  %vm258_vm9 = vcmask (!%p152_p3), 24576   ;;  %vm286_vm11 = vcmask (!%p152_p3), 97345  }
   0xa   : > { %4553 = vmatpush3.bf16.msk.msra.mxu0 (!%p152_p3), %vm4860_vm2, %v4548_v4  ;;  %4585 = vmatpush3.bf16.msk.msra.mxu1 (!%p152_p3), %vm4860_vm2, %v4548_v4  ;;  %vm260_vm3 = vcmp.eq.s32.totalorder (!%p152_p3), %v4876_v6, 0  ;;  %v5125_v56 = vadd.s32 (!%p152_p3), 8, %v4876_v6  ;;  %vm864_vm12 = vcmask (!%p152_p3), 97280  }
   0xb   : > { %4556 = vmatprep.subr.msk.bf16.mxu0 (!%p152_p3), %vm4860_vm2, %v5011_v32 }
   0xc   : > { %231 = vrot.lane.b32.xlu0 (!%p152_p3), %v4806_v3, %s4808_s21  ;;  %vm243_vm10 = vcmp.eq.s32.totalorder (!%p152_p3), %v5125_v56, 15 }
   0xe   : > { %s6519_s12 = smov (!%p180_p4, %s4796_s12), 1 }
   0xf   : > { %s4000_s22 = sshll.u32 %s6519_s12, 8 }
  0x10   : > { %s4874_s25 = scalar_lea.vmem %s6508_s0, %s4000_s22  ;;  %s6403_s27 = scalar_lea.vmem %s6511_s3, %s4000_s22 }
  0x11   : > { %v4885_v7 = vld [vmem:[%s4874_s25] sm:$0xff]  ;;  %v4890_v8 = vld [vmem:[%s4874_s25 + $0x8] sm:$0xff]  ;;  %v4893_v9 = vld [vmem:[%s4874_s25 + $0x10] sm:$0xff] }
  0x12   : > { %360 = vrot.lane.b32.xlu1 %v4885_v7, %s4808_s21  ;;  %362 = vrot.lane.b32.xlu0 %v4890_v8, %s4808_s21  ;;  %v4901_v10 = vld [vmem:[%s4874_s25 + $0x18] sm:$0xff]  ;;  %v553_v11 = vsel %vm260_vm3, 0.0, %v4885_v7  ;;  %v555_v12 = vsel %vm260_vm3, 0.0, %v4893_v9  ;;  %v4916_v13 = vld [vmem:[%s4874_s25 + $0x20] sm:$0xff]  ;;  %v489_v0 = vsel %vm243_vm10, 0.0, %v4890_v8 }
  0x13   : > { %v4919_v14 = vld [vmem:[%s4874_s25 + $0x28] sm:$0xff]  ;;  %v557_v15 = vsel %vm260_vm3, 0.0, %v4916_v13  ;;  %v4932_v16 = vld [vmem:[%s4874_s25 + $0x30] sm:$0xff]  ;;  %v4935_v17 = vld [vmem:[%s4874_s25 + $0x38] sm:$0xff]  ;;  %v491_v31 = vsel %vm243_vm10, 0.0, %v4901_v10 }
  0x14   : > { %v559_v18 = vsel %vm260_vm3, 0.0, %v4932_v16  ;;  %v4948_v19 = vld [vmem:[%s4874_s25 + $0x40] sm:$0xff]  ;;  %v4951_v20 = vld [vmem:[%s4874_s25 + $0x48] sm:$0xff]  ;;  %v4964_v22 = vld [vmem:[%s4874_s25 + $0x50] sm:$0xff] }
  0x15   : > { %v561_v21 = vsel %vm260_vm3, 0.0, %v4948_v19  ;;  %v4967_v23 = vld [vmem:[%s4874_s25 + $0x58] sm:$0xff]  ;;  %v563_v24 = vsel %vm260_vm3, 0.0, %v4964_v22  ;;  %v4980_v25 = vld [vmem:[%s4874_s25 + $0x60] sm:$0xff]  ;;  %v4983_v26 = vld [vmem:[%s4874_s25 + $0x68] sm:$0xff] }
  0x16   : > { %364 = vrot.lane.b32.xlu1 %v4893_v9, %s4808_s21  ;;  %366 = vrot.lane.b32.xlu0 %v4901_v10, %s4808_s21  ;;  %v565_v27 = vsel %vm260_vm3, 0.0, %v4980_v25  ;;  %v4996_v28 = vld [vmem:[%s4874_s25 + $0x70] sm:$0xff]  ;;  %v4999_v29 = vld [vmem:[%s4874_s25 + $0x78] sm:$0xff] }
  0x17   : > { %v567_v33 = vsel %vm260_vm3, 0.0, %v4996_v28  ;;  %v5023_v34 = vld [vmem:[%s4874_s25 + $0x80] sm:$0xff]  ;;  %v5026_v35 = vld [vmem:[%s4874_s25 + $0x88] sm:$0xff]  ;;  %v5039_v37 = vld [vmem:[%s4874_s25 + $0x90] sm:$0xff] }
  0x18   : > { %v569_v36 = vsel %vm260_vm3, 0.0, %v5023_v34  ;;  %v5042_v38 = vld [vmem:[%s4874_s25 + $0x98] sm:$0xff]  ;;  %v571_v39 = vsel %vm260_vm3, 0.0, %v5039_v37  ;;  %v5055_v40 = vld [vmem:[%s4874_s25 + $0xa0] sm:$0xff]  ;;  %v5058_v41 = vld [vmem:[%s4874_s25 + $0xa8] sm:$0xff] }
  0x19   : > { %v573_v42 = vsel %vm260_vm3, 0.0, %v5055_v40  ;;  %v5071_v43 = vld [vmem:[%s4874_s25 + $0xb0] sm:$0xff]  ;;  %v5074_v44 = vld [vmem:[%s4874_s25 + $0xb8] sm:$0xff]  ;;  %v5087_v46 = vld [vmem:[%s4874_s25 + $0xc0] sm:$0xff] }
  0x1a   : > { %617 = vrot.lane.b32.xlu1 %v553_v11, %s4807_s20  ;;  %619 = vrot.lane.b32.xlu0 %v4890_v8, %s4807_s20  ;;  %v575_v45 = vsel %vm260_vm3, 0.0, %v5071_v43  ;;  %v5090_v47 = vld [vmem:[%s4874_s25 + $0xc8] sm:$0xff]  ;;  %v577_v48 = vsel %vm260_vm3, 0.0, %v5087_v46  ;;  %v5103_v49 = vld [vmem:[%s4874_s25 + $0xd0] sm:$0xff] }
  0x1b   : > { %v5106_v50 = vld [vmem:[%s4874_s25 + $0xd8] sm:$0xff]  ;;  %v579_v51 = vsel %vm260_vm3, 0.0, %v5103_v49  ;;  %v5119_v52 = vld [vmem:[%s4874_s25 + $0xe0] sm:$0xff]  ;;  %v5122_v55 = vld [vmem:[%s4874_s25 + $0xe8] sm:$0xff] }
  0x1c   : > { %v581_v60 = vsel %vm260_vm3, 0.0, %v5119_v52  ;;  %v5167_v4 = vld [vmem:[%s4874_s25 + $0xf0] sm:$0xff]  ;;  %v3856_v8 = vld [vmem:[%s6509_s1 + $0x20] sm:$0xff] }
  0x1e   : > { %621 = vrot.lane.b32.xlu1 %v555_v12, %s4807_s20  ;;  %368 = vrot.lane.b32.xlu0 %v4916_v13, %s4808_s21  ;;  %v5176_v12 = vld [vmem:[%s4874_s25 + $0xf8] sm:$0xff] }
  0x22   : > { %370 = vrot.lane.b32.xlu1 %v4919_v14, %s4808_s21  ;;  %623 = vrot.lane.b32.xlu0 %v4901_v10, %s4807_s20 }
  0x26   : > { %625 = vrot.lane.b32.xlu1 %v557_v15, %s4807_s20  ;;  %372 = vrot.lane.b32.xlu0 %v4932_v16, %s4808_s21 }
  0x2a   : > { %374 = vrot.lane.b32.xlu1 %v4935_v17, %s4808_s21  ;;  %627 = vrot.lane.b32.xlu0 %v4919_v14, %s4807_s20 }
  0x2e   : > { %629 = vrot.lane.b32.xlu1 %v559_v18, %s4807_s20  ;;  %376 = vrot.lane.b32.xlu0 %v4948_v19, %s4808_s21 }
  0x32   : > { %378 = vrot.lane.b32.xlu1 %v4951_v20, %s4808_s21  ;;  %631 = vrot.lane.b32.xlu0 %v4935_v17, %s4807_s20 }
  0x36   : > { %633 = vrot.lane.b32.xlu1 %v561_v21, %s4807_s20  ;;  %380 = vrot.lane.b32.xlu0 %v4964_v22, %s4808_s21 }
  0x3a   : > { %382 = vrot.lane.b32.xlu1 %v4967_v23, %s4808_s21  ;;  %635 = vrot.lane.b32.xlu0 %v4951_v20, %s4807_s20 }
  0x3e   : > { %637 = vrot.lane.b32.xlu1 %v563_v24, %s4807_s20  ;;  %384 = vrot.lane.b32.xlu0 %v4980_v25, %s4808_s21 }
  0x42   : > { %386 = vrot.lane.b32.xlu1 %v4983_v26, %s4808_s21  ;;  %639 = vrot.lane.b32.xlu0 %v4967_v23, %s4807_s20 }
  0x46   : > { %641 = vrot.lane.b32.xlu1 %v565_v27, %s4807_s20  ;;  %388 = vrot.lane.b32.xlu0 %v4996_v28, %s4808_s21  ;;  %v583_v27 = vsel %vm260_vm3, 0.0, %v5167_v4 }
  0x4a   : > { %390 = vrot.lane.b32.xlu1 %v4999_v29, %s4808_s21  ;;  %643 = vrot.lane.b32.xlu0 %v4983_v26, %s4807_s20 }
  0x4e   : > { %645 = vrot.lane.b32.xlu1 %v567_v33, %s4807_s20  ;;  %392 = vrot.lane.b32.xlu0 %v5023_v34, %s4808_s21 }
  0x52   : > { %394 = vrot.lane.b32.xlu1 %v5026_v35, %s4808_s21  ;;  %647 = vrot.lane.b32.xlu0 %v4999_v29, %s4807_s20 }
  0x56   : > { %649 = vrot.lane.b32.xlu1 %v569_v36, %s4807_s20  ;;  %396 = vrot.lane.b32.xlu0 %v5039_v37, %s4808_s21 }
  0x5a   : > { %398 = vrot.lane.b32.xlu1 %v5042_v38, %s4808_s21  ;;  %651 = vrot.lane.b32.xlu0 %v5026_v35, %s4807_s20 }
  0x5e   : > { %653 = vrot.lane.b32.xlu1 %v571_v39, %s4807_s20  ;;  %400 = vrot.lane.b32.xlu0 %v5055_v40, %s4808_s21 }
  0x62   : > { %402 = vrot.lane.b32.xlu1 %v5058_v41, %s4808_s21  ;;  %655 = vrot.lane.b32.xlu0 %v5042_v38, %s4807_s20 }
  0x66   : > { %657 = vrot.lane.b32.xlu1 %v573_v42, %s4807_s20  ;;  %404 = vrot.lane.b32.xlu0 %v5071_v43, %s4808_s21 }
  0x6a   : > { %406 = vrot.lane.b32.xlu1 %v5074_v44, %s4808_s21  ;;  %659 = vrot.lane.b32.xlu0 %v5058_v41, %s4807_s20 }
  0x6e   : > { %661 = vrot.lane.b32.xlu1 %v575_v45, %s4807_s20  ;;  %408 = vrot.lane.b32.xlu0 %v5087_v46, %s4808_s21 }
  0x72   : > { %410 = vrot.lane.b32.xlu1 %v5090_v47, %s4808_s21  ;;  %663 = vrot.lane.b32.xlu0 %v5074_v44, %s4807_s20 }
  0x76   : > { %665 = vrot.lane.b32.xlu1 %v577_v48, %s4807_s20  ;;  %412 = vrot.lane.b32.xlu0 %v5103_v49, %s4808_s21 }
  0x79   : > { %v4749_v53 = vpop.permute.xlu1 %4748 }
  0x7a   : > { %414 = vrot.lane.b32.xlu1 %v5106_v50, %s4808_s21  ;;  %667 = vrot.lane.b32.xlu0 %v5090_v47, %s4807_s20  ;;  %v4744_v54 = vpop.permute.xlu0 %4743  ;;  %v4751_v61 = vunpack.i.h.bf16 %v4749_v53  ;;  %v4750_v62 = vunpack.i.l.bf16 %v4749_v53 }
  0x7b   : > { %v4746_v57 = vunpack.i.h.bf16 %v4744_v54  ;;  %v4745_v58 = vunpack.i.l.bf16 %v4744_v54 }
  0x7d   : > { %240 = vst.msk [vmem:[#allocation2 + $0x10] sm:$0xff] %vm237_vm4, %v4746_v57  ;;  %239 = vst.msk [vmem:[#allocation2 + $0x8] sm:$0xff] %vm237_vm4, %v4745_v58 }
  0x7e   : > { %669 = vrot.lane.b32.xlu1 %v579_v51, %s4807_s20  ;;  %416 = vrot.lane.b32.xlu0 %v5119_v52, %s4808_s21  ;;  %254 = vst.msk [vmem:[#allocation2 + $0x9] sm:$0xff] %vm252_vm5, %v4806_v3  ;;  %v232_v59 = vpop.permute.xlu0 %231 }
  0x7f   : > { %241 = vst.msk [vmem:[#allocation2 + $0x18] sm:$0xff] %vm237_vm4, %v232_v59 }
  0x80   : > { %255 = vst.msk [vmem:[#allocation2 + $0x11] sm:$0xff] %vm252_vm5, %v4806_v3 }
  0x81   : > { %257 = vst.msk [vmem:[#allocation2 + $0x19] sm:$0x7f] %vm256_vm6, %v4806_v3 }
  0x82   : > { %418 = vrot.lane.b32.xlu1 %v5122_v55, %s4808_s21  ;;  %671 = vrot.lane.b32.xlu0 %v5106_v50, %s4807_s20  ;;  %290 = vst.msk [vmem:[#allocation2 + $0xf] sm:$0xff] %vm288_vm7, %v4750_v62  ;;  %291 = vst.msk [vmem:[#allocation2 + $0x17] sm:$0xff] %vm288_vm7, %v4751_v61 }
  0x83   : > { %293 = vst.msk [vmem:[#allocation2 + $0x1f] sm:$0x1] %vm292_vm8, %v4806_v3 }
  0x84   : > { %v361_v63 = vpop.permute.xlu1 %360  ;;  %v363_v1 = vpop.permute.xlu0 %362 }
  0x85   : > { %456 = vst.msk [vmem:[#allocation2 + $0x20] sm:$0xff] %vm237_vm4, %v361_v63  ;;  %457 = vst.msk [vmem:[#allocation2 + $0x28] sm:$0xff] %vm237_vm4, %v363_v1 }
  0x86   : > { %552 = vst.msk [vmem:[#allocation2 + $0x20] sm:$0x1] %vm258_vm9, %v4806_v3  ;;  %673 = vrot.lane.b32.xlu1 %v581_v60, %s4807_s20  ;;  %225 = vrot.lane.b32.xlu0 %v4806_v3, %s4808_s21 }
  0x87   : > { %520 = vst.msk [vmem:[#allocation2 + $0x21] sm:$0xff] %vm252_vm5, %v4885_v7  ;;  %v3857_v7 = vld [vmem:[%s6509_s1 + $0x28] sm:$0xf] }
  0x88   : > { %v365_v2 = vpop.permute.xlu1 %364  ;;  %v367_v11 = vpop.permute.xlu0 %366  ;;  %v5188_v24 = vpack.c.bf16 %v3857_v7, %v3856_v8 }
  0x89   : > { %458 = vst.msk [vmem:[#allocation2 + $0x30] sm:$0xff] %vm237_vm4, %v365_v2  ;;  %459 = vst.msk [vmem:[#allocation2 + $0x38] sm:$0xff] %vm237_vm4, %v367_v11  ;;  %v5184_v18 = vld [vmem:[#allocation2 + $0x10] sm:$0xff] }
  0x8a   : > { %521 = vst.msk [vmem:[#allocation2 + $0x29] sm:$0xff] %vm252_vm5, %v489_v0  ;;  %4753 = vrot.lane.b32.xlu1 %v4806_v3, %s4807_s20  ;;  %522 = vst.msk [vmem:[#allocation2 + $0x31] sm:$0xff] %vm252_vm5, %v4893_v9  ;;  %420 = vrot.lane.b32.xlu0 %v5167_v4, %s4808_s21  ;;  %v5186_v21 = vld [vmem:[#allocation2 + $0x18] sm:$0xff] }
  0x8b   : > { %4222 = vmatprep.mubr.msk.f32.mxu0 %vm864_vm12, %v5184_v18 }
  0x8c   : > { %v618_v15 = vpop.permute.xlu1 %617  ;;  %4223 = vmatmul.mubr.msk.f32.vlgmr.msra.gmra.mrb[0].mxu0 %vm864_vm12, %v5186_v21  ;;  %v620_v9 = vpop.permute.xlu0 %619 }
  0x8d   : > { %713 = vst.msk [vmem:[#allocation2 + $0x1f] sm:$0xfe] %vm286_vm11, %v618_v15  ;;  %4559 = vmatpush3.bf16.msk.msra.mxu0 %vm4860_vm2, %v5011_v32 }
  0x8e   : > { %422 = vrot.lane.b32.xlu1 %v5176_v12, %s4808_s21  ;;  %714 = vst.msk [vmem:[#allocation2 + $0x27] sm:$0xff] %vm288_vm7, %v620_v9  ;;  %675 = vrot.lane.b32.xlu0 %v5122_v55, %s4807_s20 }
  0x8f   : > { %4562 = vmatprep.subr.msk.bf16.mxu0 %vm4860_vm2, %v5188_v24 }
  0x90   : > { %v622_v30 = vpop.permute.xlu1 %621  ;;  %v369_v33 = vpop.permute.xlu0 %368 }
  0x91   : > { %715 = vst.msk [vmem:[#allocation2 + $0x2f] sm:$0xff] %vm288_vm7, %v622_v30 }
  0x92   : > { %677 = vrot.lane.b32.xlu1 %v583_v27, %s4807_s20  ;;  %460 = vst.msk [vmem:[#allocation2 + $0x40] sm:$0xff] %vm237_vm4, %v369_v33  ;;  %679 = vrot.lane.b32.xlu0 %v5176_v12, %s4807_s20 }
  0x93   : > { %523 = vst.msk [vmem:[#allocation2 + $0x39] sm:$0xff] %vm252_vm5, %v491_v31 }
  0x94   : > { %v371_v36 = vpop.permute.xlu1 %370  ;;  %v624_v10 = vpop.permute.xlu0 %623 }
  0x95   : > { %461 = vst.msk [vmem:[#allocation2 + $0x48] sm:$0xff] %vm237_vm4, %v371_v36  ;;  %v5222_v32 = vld [vmem:[#allocation2 + $0x20] sm:$0xff] }
  0x96   : > { %524 = vst.msk [vmem:[#allocation2 + $0x41] sm:$0xff] %vm252_vm5, %v4916_v13  ;;  %4758 = vrot.lane.b32.xlu1 %v4806_v3, %s4808_s21  ;;  %4225 = vmatprep.mubr.msk.f32.mxu0 %vm864_vm12, %v5222_v32  ;;  %v493_v13 = vsel %vm243_vm10, 0.0, %v4919_v14 }
  0x97   : > { %716 = vst.msk [vmem:[#allocation2 + $0x37] sm:$0xff] %vm288_vm7, %v624_v10  ;;  %4763 = vrot.lane.b32.xlu0 %v4806_v3, %s4808_s21 }
  0x98   : > { %v626_v39 = vpop.permute.xlu1 %625  ;;  %v5227_v42 = vld [vmem:[#allocation2 + $0x28] sm:$0xff]  ;;  %v373_v45 = vpop.permute.xlu0 %372 }
  0x99   : > { %717 = vst.msk [vmem:[#allocation2 + $0x3f] sm:$0xff] %vm288_vm7, %v626_v39  ;;  %4226 = vmatmul.mubr.msk.f32.gmra.mrb[2].mxu0 %vm864_vm12, %v5227_v42 }
  0x9a   : > { %4768 = vrot.lane.b32.xlu1 %v4806_v3, %s4807_s20  ;;  %462 = vst.msk [vmem:[#allocation2 + $0x50] sm:$0xff] %vm237_vm4, %v373_v45 }
  0x9b   : > { %525 = vst.msk [vmem:[#allocation2 + $0x49] sm:$0xff] %vm252_vm5, %v493_v13  ;;  %808 = vrot.lane.b32.xlu0 %v4806_v3, %s4807_s20 }
  0x9c   : > { %v375_v48 = vpop.permute.xlu1 %374  ;;  %v628_v14 = vpop.permute.xlu0 %627 }
  0x9d   : > { %463 = vst.msk [vmem:[#allocation2 + $0x58] sm:$0xff] %vm237_vm4, %v375_v48 }
  0x9e   : > { %526 = vst.msk [vmem:[#allocation2 + $0x51] sm:$0xff] %vm252_vm5, %v4932_v16  ;;  %2126 = vrot.lane.b32.xlu1 %v4806_v3, %s4808_s21  ;;  %v5248_v51 = vld [vmem:[#allocation2 + $0x30] sm:$0xff]  ;;  %v495_v16 = vsel %vm243_vm10, 0.0, %v4935_v17 }
  0x9f   : > { %718 = vst.msk [vmem:[#allocation2 + $0x47] sm:$0xff] %vm288_vm7, %v628_v14  ;;  %4228 = vmatprep.mubr.msk.f32.mxu0 %vm864_vm12, %v5248_v51 }
  0xa0   : > { %v630_v53 = vpop.permute.xlu1 %629  ;;  %v5253_v54 = vld [vmem:[#allocation2 + $0x38] sm:$0xff]  ;;  %v377_v57 = vpop.permute.xlu0 %376 }
  0xa1   : > { %719 = vst.msk [vmem:[#allocation2 + $0x4f] sm:$0xff] %vm288_vm7, %v630_v53  ;;  %4229 = vmatmul.mubr.msk.f32.gmra.mrb[4].mxu0 %vm864_vm12, %v5253_v54 }
  0xa2   : > { %464 = vst.msk [vmem:[#allocation2 + $0x60] sm:$0xff] %vm237_vm4, %v377_v57 }
  0xa3   : > { %527 = vst.msk [vmem:[#allocation2 + $0x59] sm:$0xff] %vm252_vm5, %v495_v16 }
  0xa4   : > { %v379_v58 = vpop.permute.xlu1 %378  ;;  %v632_v59 = vpop.permute.xlu0 %631 }
  0xa5   : > { %465 = vst.msk [vmem:[#allocation2 + $0x68] sm:$0xff] %vm237_vm4, %v379_v58 }
  0xa6   : > { %528 = vst.msk [vmem:[#allocation2 + $0x61] sm:$0xff] %vm252_vm5, %v4948_v19  ;;  %v5266_v60 = vld [vmem:[#allocation2 + $0x40] sm:$0xff]  ;;  %v497_v19 = vsel %vm243_vm10, 0.0, %v4951_v20 }
  0xa7   : > { %720 = vst.msk [vmem:[#allocation2 + $0x57] sm:$0xff] %vm288_vm7, %v632_v59  ;;  %4231 = vmatprep.mubr.msk.f32.mxu0 %vm864_vm12, %v5266_v60 }
  0xa8   : > { %v634_v61 = vpop.permute.xlu1 %633  ;;  %v5271_v17 = vld [vmem:[#allocation2 + $0x48] sm:$0xff]  ;;  %v381_v62 = vpop.permute.xlu0 %380 }
  0xa9   : > { %721 = vst.msk [vmem:[#allocation2 + $0x5f] sm:$0xff] %vm288_vm7, %v634_v61  ;;  %4232 = vmatmul.mubr.msk.f32.gmra.mrb[6].mxu0 %vm864_vm12, %v5271_v17 }
  0xaa   : > { %466 = vst.msk [vmem:[#allocation2 + $0x70] sm:$0xff] %vm237_vm4, %v381_v62 }
  0xab   : > { %529 = vst.msk [vmem:[#allocation2 + $0x69] sm:$0xff] %vm252_vm5, %v497_v19 }
  0xac   : > { %v383_v63 = vpop.permute.xlu1 %382  ;;  %v636_v0 = vpop.permute.xlu0 %635 }
  0xad   : > { %467 = vst.msk [vmem:[#allocation2 + $0x78] sm:$0xff] %vm237_vm4, %v383_v63 }
  0xae   : > { %530 = vst.msk [vmem:[#allocation2 + $0x71] sm:$0xff] %vm252_vm5, %v4964_v22  ;;  %v5284_v1 = vld [vmem:[#allocation2 + $0x50] sm:$0xff]  ;;  %v499_v22 = vsel %vm243_vm10, 0.0, %v4967_v23 }
  0xaf   : > { %722 = vst.msk [vmem:[#allocation2 + $0x67] sm:$0xff] %vm288_vm7, %v636_v0  ;;  %4234 = vmatprep.mubr.msk.f32.mxu0 %vm864_vm12, %v5284_v1 }
  0xb0   : > { %v638_v2 = vpop.permute.xlu1 %637  ;;  %v5289_v20 = vld [vmem:[#allocation2 + $0x58] sm:$0xff]  ;;  %v385_v8 = vpop.permute.xlu0 %384 }
  0xb1   : > { %723 = vst.msk [vmem:[#allocation2 + $0x6f] sm:$0xff] %vm288_vm7, %v638_v2  ;;  %4235 = vmatmul.mubr.msk.f32.gmra.mrb[8].mxu0 %vm864_vm12, %v5289_v20 }
  0xb2   : > { %468 = vst.msk [vmem:[#allocation2 + $0x80] sm:$0xff] %vm237_vm4, %v385_v8 }
  0xb3   : > { %531 = vst.msk [vmem:[#allocation2 + $0x79] sm:$0xff] %vm252_vm5, %v499_v22 }
  0xb4   : > { %v387_v7 = vpop.permute.xlu1 %386  ;;  %v640_v11 = vpop.permute.xlu0 %639 }
  0xb5   : > { %469 = vst.msk [vmem:[#allocation2 + $0x88] sm:$0xff] %vm237_vm4, %v387_v7 }
  0xb6   : > { %532 = vst.msk [vmem:[#allocation2 + $0x81] sm:$0xff] %vm252_vm5, %v4980_v25  ;;  %v5302_v15 = vld [vmem:[#allocation2 + $0x60] sm:$0xff]  ;;  %v501_v25 = vsel %vm243_vm10, 0.0, %v4983_v26 }
  0xb7   : > { %724 = vst.msk [vmem:[#allocation2 + $0x77] sm:$0xff] %vm288_vm7, %v640_v11  ;;  %4237 = vmatprep.mubr.msk.f32.mxu0 %vm864_vm12, %v5302_v15 }
  0xb8   : > { %v642_v9 = vpop.permute.xlu1 %641  ;;  %v5307_v23 = vld [vmem:[#allocation2 + $0x68] sm:$0xff]  ;;  %v389_v27 = vpop.permute.xlu0 %388 }
  0xb9   : > { %725 = vst.msk [vmem:[#allocation2 + $0x7f] sm:$0xff] %vm288_vm7, %v642_v9  ;;  %4238 = vmatmul.mubr.msk.f32.gmra.mrb[10].mxu0 %vm864_vm12, %v5307_v23 }
  0xba   : > { %470 = vst.msk [vmem:[#allocation2 + $0x90] sm:$0xff] %vm237_vm4, %v389_v27 }
  0xbb   : > { %533 = vst.msk [vmem:[#allocation2 + $0x89] sm:$0xff] %vm252_vm5, %v501_v25 }
  0xbc   : > { %v391_v30 = vpop.permute.xlu1 %390  ;;  %v644_v31 = vpop.permute.xlu0 %643 }
  0xbd   : > { %471 = vst.msk [vmem:[#allocation2 + $0x98] sm:$0xff] %vm237_vm4, %v391_v30 }
  0xbe   : > { %534 = vst.msk [vmem:[#allocation2 + $0x91] sm:$0xff] %vm252_vm5, %v4996_v28  ;;  %v5320_v33 = vld [vmem:[#allocation2 + $0x70] sm:$0xff]  ;;  %v503_v28 = vsel %vm243_vm10, 0.0, %v4999_v29 }
  0xbf   : > { %726 = vst.msk [vmem:[#allocation2 + $0x87] sm:$0xff] %vm288_vm7, %v644_v31  ;;  %4240 = vmatprep.mubr.msk.f32.mxu0 %vm864_vm12, %v5320_v33 }
  0xc0   : > { %v646_v36 = vpop.permute.xlu1 %645  ;;  %v5325_v26 = vld [vmem:[#allocation2 + $0x78] sm:$0xff]  ;;  %v393_v10 = vpop.permute.xlu0 %392 }
  0xc1   : > { %727 = vst.msk [vmem:[#allocation2 + $0x8f] sm:$0xff] %vm288_vm7, %v646_v36  ;;  %4241 = vmatmul.mubr.msk.f32.gmra.mrb[12].mxu0 %vm864_vm12, %v5325_v26 }
  0xc2   : > { %472 = vst.msk [vmem:[#allocation2 + $0xa0] sm:$0xff] %vm237_vm4, %v393_v10 }
  0xc3   : > { %535 = vst.msk [vmem:[#allocation2 + $0x99] sm:$0xff] %vm252_vm5, %v503_v28 }
  0xc4   : > { %v395_v39 = vpop.permute.xlu1 %394  ;;  %v648_v13 = vpop.permute.xlu0 %647 }
  0xc5   : > { %473 = vst.msk [vmem:[#allocation2 + $0xa8] sm:$0xff] %vm237_vm4, %v395_v39 }
  0xc6   : > { %536 = vst.msk [vmem:[#allocation2 + $0xa1] sm:$0xff] %vm252_vm5, %v5023_v34  ;;  %v5338_v45 = vld [vmem:[#allocation2 + $0x80] sm:$0xff]  ;;  %v505_v34 = vsel %vm243_vm10, 0.0, %v5026_v35 }
  0xc7   : > { %728 = vst.msk [vmem:[#allocation2 + $0x97] sm:$0xff] %vm288_vm7, %v648_v13  ;;  %4243 = vmatprep.mubr.msk.f32.mxu0 %vm864_vm12, %v5338_v45 }
  0xc8   : > { %v650_v48 = vpop.permute.xlu1 %649  ;;  %v5343_v29 = vld [vmem:[#allocation2 + $0x88] sm:$0xff]  ;;  %v397_v14 = vpop.permute.xlu0 %396 }
  0xc9   : > { %729 = vst.msk [vmem:[#allocation2 + $0x9f] sm:$0xff] %vm288_vm7, %v650_v48  ;;  %4244 = vmatmul.mubr.msk.f32.gmra.mrb[14].mxu0 %vm864_vm12, %v5343_v29 }
  0xca   : > { %474 = vst.msk [vmem:[#allocation2 + $0xb0] sm:$0xff] %vm237_vm4, %v397_v14 }
  0xcb   : > { %537 = vst.msk [vmem:[#allocation2 + $0xa9] sm:$0xff] %vm252_vm5, %v505_v34 }
  0xcc   : > { %v399_v53 = vpop.permute.xlu1 %398  ;;  %v652_v16 = vpop.permute.xlu0 %651 }
  0xcd   : > { %475 = vst.msk [vmem:[#allocation2 + $0xb8] sm:$0xff] %vm237_vm4, %v399_v53 }
  0xce   : > { %538 = vst.msk [vmem:[#allocation2 + $0xb1] sm:$0xff] %vm252_vm5, %v5039_v37  ;;  %v5356_v57 = vld [vmem:[#allocation2 + $0x90] sm:$0xff]  ;;  %v507_v37 = vsel %vm243_vm10, 0.0, %v5042_v38 }
  0xcf   : > { %730 = vst.msk [vmem:[#allocation2 + $0xa7] sm:$0xff] %vm288_vm7, %v652_v16  ;;  %4246 = vmatprep.mubr.msk.f32.mxu0 %vm864_vm12, %v5356_v57 }
  0xd0   : > { %v654_v58 = vpop.permute.xlu1 %653  ;;  %v5361_v35 = vld [vmem:[#allocation2 + $0x98] sm:$0xff]  ;;  %v401_v59 = vpop.permute.xlu0 %400 }
  0xd1   : > { %731 = vst.msk [vmem:[#allocation2 + $0xaf] sm:$0xff] %vm288_vm7, %v654_v58  ;;  %4247 = vmatmul.mubr.msk.f32.gmra.mrb[16].mxu0 %vm864_vm12, %v5361_v35 }
  0xd2   : > { %476 = vst.msk [vmem:[#allocation2 + $0xc0] sm:$0xff] %vm237_vm4, %v401_v59  ;;  %v517_v59 = vsel %vm243_vm10, 0.0, %v5122_v55 }
  0xd3   : > { %539 = vst.msk [vmem:[#allocation2 + $0xb9] sm:$0xff] %vm252_vm5, %v507_v37 }
  0xd4   : > { %v403_v61 = vpop.permute.xlu1 %402  ;;  %v656_v19 = vpop.permute.xlu0 %655 }
  0xd5   : > { %477 = vst.msk [vmem:[#allocation2 + $0xc8] sm:$0xff] %vm237_vm4, %v403_v61  ;;  %v519_v61 = vsel %vm243_vm10, 0.0, %v5176_v12 }
  0xd6   : > { %540 = vst.msk [vmem:[#allocation2 + $0xc1] sm:$0xff] %vm252_vm5, %v5055_v40  ;;  %v5374_v62 = vld [vmem:[#allocation2 + $0xa0] sm:$0xff]  ;;  %v509_v40 = vsel %vm243_vm10, 0.0, %v5058_v41 }
  0xd7   : > { %732 = vst.msk [vmem:[#allocation2 + $0xb7] sm:$0xff] %vm288_vm7, %v656_v19  ;;  %4249 = vmatprep.mubr.msk.f32.mxu0 %vm864_vm12, %v5374_v62 }
  0xd8   : > { %v658_v63 = vpop.permute.xlu1 %657  ;;  %v5379_v38 = vld [vmem:[#allocation2 + $0xa8] sm:$0xff]  ;;  %v405_v0 = vpop.permute.xlu0 %404 }
  0xd9   : > { %733 = vst.msk [vmem:[#allocation2 + $0xbf] sm:$0xff] %vm288_vm7, %v658_v63  ;;  %4250 = vmatmul.mubr.msk.f32.gmra.mrb[18].mxu0 %vm864_vm12, %v5379_v38 }
  0xda   : > { %478 = vst.msk [vmem:[#allocation2 + $0xd0] sm:$0xff] %vm237_vm4, %v405_v0 }
  0xdb   : > { %541 = vst.msk [vmem:[#allocation2 + $0xc9] sm:$0xff] %vm252_vm5, %v509_v40 }
  0xdc   : > { %v407_v2 = vpop.permute.xlu1 %406  ;;  %v660_v22 = vpop.permute.xlu0 %659 }
  0xdd   : > { %479 = vst.msk [vmem:[#allocation2 + $0xd8] sm:$0xff] %vm237_vm4, %v407_v2 }
  0xde   : > { %542 = vst.msk [vmem:[#allocation2 + $0xd1] sm:$0xff] %vm252_vm5, %v5071_v43  ;;  %v5392_v8 = vld [vmem:[#allocation2 + $0xb0] sm:$0xff]  ;;  %v511_v43 = vsel %vm243_vm10, 0.0, %v5074_v44 }
  0xdf   : > { %734 = vst.msk [vmem:[#allocation2 + $0xc7] sm:$0xff] %vm288_vm7, %v660_v22  ;;  %4252 = vmatprep.mubr.msk.f32.mxu0 %vm864_vm12, %v5392_v8 }
  0xe0   : > { %v662_v7 = vpop.permute.xlu1 %661  ;;  %v5397_v41 = vld [vmem:[#allocation2 + $0xb8] sm:$0xff]  ;;  %v409_v11 = vpop.permute.xlu0 %408 }
  0xe1   : > { %735 = vst.msk [vmem:[#allocation2 + $0xcf] sm:$0xff] %vm288_vm7, %v662_v7  ;;  %4253 = vmatmul.mubr.msk.f32.gmra.mrb[20].mxu0 %vm864_vm12, %v5397_v41 }
  0xe2   : > { %480 = vst.msk [vmem:[#allocation2 + $0xe0] sm:$0xff] %vm237_vm4, %v409_v11 }
  0xe3   : > { %543 = vst.msk [vmem:[#allocation2 + $0xd9] sm:$0xff] %vm252_vm5, %v511_v43 }
  0xe4   : > { %v411_v9 = vpop.permute.xlu1 %410  ;;  %v664_v25 = vpop.permute.xlu0 %663 }
  0xe5   : > { %481 = vst.msk [vmem:[#allocation2 + $0xe8] sm:$0xff] %vm237_vm4, %v411_v9 }
  0xe6   : > { %544 = vst.msk [vmem:[#allocation2 + $0xe1] sm:$0xff] %vm252_vm5, %v5087_v46  ;;  %v5410_v27 = vld [vmem:[#allocation2 + $0xc0] sm:$0xff]  ;;  %v513_v46 = vsel %vm243_vm10, 0.0, %v5090_v47 }
  0xe7   : > { %736 = vst.msk [vmem:[#allocation2 + $0xd7] sm:$0xff] %vm288_vm7, %v664_v25  ;;  %4255 = vmatprep.mubr.msk.f32.mxu0 %vm864_vm12, %v5410_v27 }
  0xe8   : > { %v666_v30 = vpop.permute.xlu1 %665  ;;  %v5415_v44 = vld [vmem:[#allocation2 + $0xc8] sm:$0xff]  ;;  %v413_v31 = vpop.permute.xlu0 %412 }
  0xe9   : > { %737 = vst.msk [vmem:[#allocation2 + $0xdf] sm:$0xff] %vm288_vm7, %v666_v30  ;;  %4256 = vmatmul.mubr.msk.f32.gmra.mrb[22].mxu0 %vm864_vm12, %v5415_v44 }
  0xea   : > { %482 = vst.msk [vmem:[#allocation2 + $0xf0] sm:$0xff] %vm237_vm4, %v413_v31 }
  0xeb   : > { %545 = vst.msk [vmem:[#allocation2 + $0xe9] sm:$0xff] %vm252_vm5, %v513_v46 }
  0xec   : > { %v415_v36 = vpop.permute.xlu1 %414  ;;  %v668_v28 = vpop.permute.xlu0 %667 }
  0xed   : > { %483 = vst.msk [vmem:[#allocation2 + $0xf8] sm:$0xff] %vm237_vm4, %v415_v36 }
  0xee   : > { %546 = vst.msk [vmem:[#allocation2 + $0xf1] sm:$0xff] %vm252_vm5, %v5103_v49  ;;  %v5428_v10 = vld [vmem:[#allocation2 + $0xd0] sm:$0xff]  ;;  %v515_v49 = vsel %vm243_vm10, 0.0, %v5106_v50 }
  0xef   : > { %738 = vst.msk [vmem:[#allocation2 + $0xe7] sm:$0xff] %vm288_vm7, %v668_v28  ;;  %4258 = vmatprep.mubr.msk.f32.mxu0 %vm864_vm12, %v5428_v10 }
  0xf0   : > { %v670_v39 = vpop.permute.xlu1 %669  ;;  %v5433_v47 = vld [vmem:[#allocation2 + $0xd8] sm:$0xff]  ;;  %v417_v13 = vpop.permute.xlu0 %416 }
  0xf1   : > { %739 = vst.msk [vmem:[#allocation2 + $0xef] sm:$0xff] %vm288_vm7, %v670_v39  ;;  %4259 = vmatmul.mubr.msk.f32.gmra.mrb[24].mxu0 %vm864_vm12, %v5433_v47 }
  0xf2   : > { %484 = vst.msk [vmem:[#allocation2 + $0x100] sm:$0xff] %vm237_vm4, %v417_v13 }
  0xf3   : > { %547 = vst.msk [vmem:[#allocation2 + $0xf9] sm:$0xff] %vm252_vm5, %v515_v49 }
  0xf4   : > { %v419_v48 = vpop.permute.xlu1 %418  ;;  %v672_v34 = vpop.permute.xlu0 %671 }
  0xf5   : > { %485 = vst.msk [vmem:[#allocation2 + $0x108] sm:$0xff] %vm237_vm4, %v419_v48 }
  0xf6   : > { %548 = vst.msk [vmem:[#allocation2 + $0x101] sm:$0xff] %vm252_vm5, %v5119_v52  ;;  %v5446_v14 = vld [vmem:[#allocation2 + $0xe0] sm:$0xff] }
  0xf7   : > { %740 = vst.msk [vmem:[#allocation2 + $0xf7] sm:$0xff] %vm288_vm7, %v672_v34  ;;  %4261 = vmatprep.mubr.msk.f32.mxu0 %vm864_vm12, %v5446_v14 }
  0xf8   : > { %v674_v53 = vpop.permute.xlu1 %673  ;;  %v5451_v50 = vld [vmem:[#allocation2 + $0xe8] sm:$0xff]  ;;  %v226_v16 = vpop.permute.xlu0 %225 }
  0xf9   : > { %741 = vst.msk [vmem:[#allocation2 + $0xff] sm:$0xff] %vm288_vm7, %v674_v53  ;;  %4262 = vmatmul.mubr.msk.f32.gmra.mrb[26].mxu0 %vm864_vm12, %v5451_v50 }
  0xfa   : > { %238 = vst.msk [vmem:[#allocation2] sm:$0xff] %vm237_vm4, %v226_v16 }
  0xfb   : > { %253 = vst.msk [vmem:[#allocation2 + $0x1] sm:$0xff] %vm252_vm5, %v4806_v3 }
  0xfc   : > { %v4754_v52 = vpop.permute.xlu1 %4753  ;;  %259 = vst.msk [vmem:[#allocation2] sm:$0x1] %vm258_vm9, %v4806_v3  ;;  %v421_v19 = vpop.permute.xlu0 %420 }
  0xfd   : > { %v4756_v58 = vunpack.i.h.bf16 %v4754_v52  ;;  %v4755_v37 = vunpack.i.l.bf16 %v4754_v52  ;;  %486 = vst.msk [vmem:[#allocation2 + $0x110] sm:$0xff] %vm237_vm4, %v421_v19 }
  0xfe   : > { %v5469_v63 = vld [vmem:[#allocation2 + $0xf0] sm:$0xff]  ;;  %549 = vst.msk [vmem:[#allocation2 + $0x109] sm:$0xff] %vm252_vm5, %v517_v59 }
  0xff   : > { %289 = vst.msk [vmem:[#allocation2 + $0x7] sm:$0xff] %vm288_vm7, %v4756_v58  ;;  %4264 = vmatprep.mubr.msk.f32.mxu0 %vm864_vm12, %v5469_v63 }
 0x100   : > { %287 = vst.msk [vmem:[#allocation2 - $0x1] sm:$0xfe] %vm286_vm11, %v4755_v37  ;;  %v5474_v40 = vld [vmem:[#allocation2 + $0xf8] sm:$0xff]  ;;  %v423_v0 = vpop.permute.xlu1 %422  ;;  %v676_v55 = vpop.permute.xlu0 %675 }
 0x101   : > { %4265 = vmatmul.mubr.msk.f32.gmra.mrb[28].mxu0 %vm864_vm12, %v5474_v40  ;;  %487 = vst.msk [vmem:[#allocation2 + $0x118] sm:$0xff] %vm237_vm4, %v423_v0 }
 0x102   : > { %550 = vst.msk [vmem:[#allocation2 + $0x111] sm:$0xff] %vm252_vm5, %v5167_v4 }
 0x103   : > { %551 = vst.msk [vmem:[#allocation2 + $0x119] sm:$0x7f] %vm256_vm6, %v519_v61 }
 0x104   : > { %745 = vst.msk [vmem:[#allocation2 + $0x11f] sm:$0x1] %vm292_vm8, %v4806_v3  ;;  %v678_v12 = vpop.permute.xlu1 %677  ;;  %v680_v7 = vpop.permute.xlu0 %679 }
 0x105   : > { %742 = vst.msk [vmem:[#allocation2 + $0x107] sm:$0xff] %vm288_vm7, %v676_v55  ;;  %743 = vst.msk [vmem:[#allocation2 + $0x10f] sm:$0xff] %vm288_vm7, %v678_v12 }
 0x106   : > { %v822_v22 = vld [vmem:[#allocation2 + $0x8] sm:$0xff]  ;;  %744 = vst.msk [vmem:[#allocation2 + $0x117] sm:$0xff] %vm288_vm7, %v680_v7 }
 0x107   : > { %v821_v2 = vld [vmem:[#allocation2] sm:$0xff] }
 0x108   : > { %4280 = vmatprep.mubr.msk.f32.mxu0 %vm864_vm12, %v821_v2  ;;  %v4759_v4 = vpop.permute.xlu1 %4758 }
 0x109   : > { %4281 = vmatmul.mubr.msk.f32.vlgmr.msra.gmra.mrb[30].mxu0 %vm864_vm12, %v822_v22  ;;  %v4761_v43 = vunpack.i.h.bf16 %v4759_v4  ;;  %v4760_v11 = vunpack.i.l.bf16 %v4759_v4  ;;  %v4764_v25 = vpop.permute.xlu0 %4763 }
 0x10a   : > { %4565 = vmatpush3.bf16.msk.msra.mxu0 %vm4860_vm2, %v5188_v24  ;;  %4283 = vmatprep.mubr.msk.f32.mxu0 %vm864_vm12, %v5184_v18  ;;  %v4766_v18 = vunpack.i.h.bf16 %v4764_v25  ;;  %v4765_v24 = vunpack.i.l.bf16 %v4764_v25 }
 0x10b   : > { %784 = vst.msk [vmem:[#allocation2 + $0x128] sm:$0xff] %vm237_vm4, %v4761_v43  ;;  %783 = vst.msk [vmem:[#allocation2 + $0x120] sm:$0xff] %vm237_vm4, %v4760_v11 }
 0x10c   : > { %v5495_v9 = vld [vmem:[#allocation2 + $0x100] sm:$0xff]  ;;  %v5503_v30 = vld [vmem:[#allocation2 + $0x108] sm:$0xff]  ;;  %791 = vst.msk [vmem:[#allocation2 + $0x121] sm:$0xff] %vm252_vm5, %v4806_v3  ;;  %v4769_v46 = vpop.permute.xlu1 %4768 }
 0x10d   : > { %4284 = vmatmul.mubr.msk.f32.gmra.mrb[2].mxu0 %vm864_vm12, %v5186_v21  ;;  %4267 = vmatprep.mubr.msk.f32.mxu1 %vm864_vm12, %v5495_v9  ;;  %795 = vst.msk [vmem:[#allocation2 + $0x120] sm:$0x1] %vm258_vm9, %v4806_v3  ;;  %v4771_v21 = vunpack.i.h.bf16 %v4769_v46  ;;  %v4770_v31 = vunpack.i.l.bf16 %v4769_v46  ;;  %v5515_v36 = vld [vmem:[#allocation2 + $0x110] sm:$0xff]  ;;  %v5517_v28 = vld [vmem:[#allocation2 + $0x118] sm:$0xff]  ;;  %v809_v39 = vpop.permute.xlu0 %808 }
 0x10e   : > { %4286 = vmatprep.mubr.msk.f32.mxu0 %vm864_vm12, %v5222_v32  ;;  %4268 = vmatmul.mubr.msk.f32.vlgmr.msra.gmra.mrb[0].mxu1 %vm864_vm12, %v5503_v30  ;;  %786 = vst.msk [vmem:[#allocation2 + $0x138] sm:$0xff] %vm237_vm4, %v4766_v18  ;;  %785 = vst.msk [vmem:[#allocation2 + $0x130] sm:$0xff] %vm237_vm4, %v4765_v24 }
 0x10f   : > { %794 = vst.msk [vmem:[#allocation2 + $0x139] sm:$0x7f] %vm256_vm6, %v4806_v3  ;;  %4270 = vmatprep.mubr.msk.f32.mxu1 %vm864_vm12, %v5515_v36 }
 0x110   : > { %792 = vst.msk [vmem:[#allocation2 + $0x129] sm:$0xff] %vm252_vm5, %v4806_v3  ;;  %793 = vst.msk [vmem:[#allocation2 + $0x131] sm:$0xff] %vm252_vm5, %v4806_v3 }
 0x111   : > { %816 = vst.msk [vmem:[#allocation2 + $0x11f] sm:$0xfe] %vm286_vm11, %v4770_v31  ;;  %4287 = vmatmul.mubr.msk.f32.gmra.mrb[4].mxu0 %vm864_vm12, %v5227_v42 }
 0x112   : > { %820 = vst.msk [vmem:[#allocation2 + $0x13f] sm:$0x1] %vm292_vm8, %v4806_v3  ;;  %4289 = vmatprep.mubr.msk.f32.mxu0 %vm864_vm12, %v5248_v51  ;;  %4271 = vmatmul.mubr.msk.f32.gmra.mrb[2].mxu1 %vm864_vm12, %v5517_v28 }
 0x113   : > { %817 = vst.msk [vmem:[#allocation2 + $0x127] sm:$0xff] %vm288_vm7, %v4771_v21  ;;  %818 = vst.msk [vmem:[#allocation2 + $0x12f] sm:$0xff] %vm288_vm7, %v809_v39 }
 0x115   : > { %4290 = vmatmul.mubr.msk.f32.gmra.mrb[6].mxu0 %vm864_vm12, %v5253_v54 }
 0x116   : > { %4292 = vmatprep.mubr.msk.f32.mxu0 %vm864_vm12, %v5266_v60 }
 0x119   : > { %4293 = vmatmul.mubr.msk.f32.gmra.mrb[8].mxu0 %vm864_vm12, %v5271_v17 }
 0x11a   : > { %v5542_v49 = vld [vmem:[#allocation2 + $0x120] sm:$0xff]  ;;  %v5546_v13 = vld [vmem:[#allocation2 + $0x128] sm:$0xff]  ;;  %4295 = vmatprep.mubr.msk.f32.mxu0 %vm864_vm12, %v5284_v1 }
 0x11b   : > { %4273 = vmatprep.mubr.msk.f32.mxu1 %vm864_vm12, %v5542_v49 }
 0x11c   : > { %4274 = vmatmul.mubr.msk.f32.gmra.mrb[4].mxu1 %vm864_vm12, %v5546_v13 }
 0x11d   : > { %4296 = vmatmul.mubr.msk.f32.gmra.mrb[10].mxu0 %vm864_vm12, %v5289_v20 }
 0x11e   : > { %4298 = vmatprep.mubr.msk.f32.mxu0 %vm864_vm12, %v5302_v15 }
 0x121   : > { %4299 = vmatmul.mubr.msk.f32.gmra.mrb[12].mxu0 %vm864_vm12, %v5307_v23 }
 0x122   : > { %4301 = vmatprep.mubr.msk.f32.mxu0 %vm864_vm12, %v5320_v33 }
 0x125   : > { %4302 = vmatmul.mubr.msk.f32.gmra.mrb[14].mxu0 %vm864_vm12, %v5325_v26 }
 0x126   : > { %4304 = vmatprep.mubr.msk.f32.mxu0 %vm864_vm12, %v5338_v45 }
 0x129   : > { %4305 = vmatmul.mubr.msk.f32.gmra.mrb[16].mxu0 %vm864_vm12, %v5343_v29 }
 0x12a   : > { %4307 = vmatprep.mubr.msk.f32.mxu0 %vm864_vm12, %v5356_v57 }
 0x12d   : > { %4308 = vmatmul.mubr.msk.f32.gmra.mrb[18].mxu0 %vm864_vm12, %v5361_v35 }
 0x12e   : > { %4310 = vmatprep.mubr.msk.f32.mxu0 %vm864_vm12, %v5374_v62 }
 0x131   : > { %4311 = vmatmul.mubr.msk.f32.gmra.mrb[20].mxu0 %vm864_vm12, %v5379_v38 }
 0x132   : > { %4313 = vmatprep.mubr.msk.f32.mxu0 %vm864_vm12, %v5392_v8 }
 0x135   : > { %4314 = vmatmul.mubr.msk.f32.gmra.mrb[22].mxu0 %vm864_vm12, %v5397_v41 }
 0x136   : > { %4316 = vmatprep.mubr.msk.f32.mxu0 %vm864_vm12, %v5410_v27 }
 0x139   : > { %4317 = vmatmul.mubr.msk.f32.gmra.mrb[24].mxu0 %vm864_vm12, %v5415_v44 }
 0x13a   : > { %4319 = vmatprep.mubr.msk.f32.mxu0 %vm864_vm12, %v5428_v10 }
 0x13d   : > { %4320 = vmatmul.mubr.msk.f32.gmra.mrb[26].mxu0 %vm864_vm12, %v5433_v47 }
 0x13e   : > { %4322 = vmatprep.mubr.msk.f32.mxu0 %vm864_vm12, %v5446_v14 }
 0x141   : > { %4323 = vmatmul.mubr.msk.f32.gmra.mrb[28].mxu0 %vm864_vm12, %v5451_v50 }
 0x142   : > { %4325 = vmatprep.mubr.msk.f32.mxu0 %vm864_vm12, %v5469_v63 }
 0x145   : > { %4326 = vmatmul.mubr.msk.f32.gmra.mrb[32].mxu0 %vm864_vm12, %v5474_v40 }
 0x146   : > { %4328 = vmatprep.mubr.msk.f32.mxu0 %vm864_vm12, %v5495_v9 }
 0x149   : > { %4329 = vmatmul.mubr.msk.f32.gmra.mrb[34].mxu0 %vm864_vm12, %v5503_v30 }
 0x14a   : > { %4331 = vmatprep.mubr.msk.f32.mxu0 %vm864_vm12, %v5515_v36 }
 0x14d   : > { %4332 = vmatmul.mubr.msk.f32.gmra.mrb[36].mxu0 %vm864_vm12, %v5517_v28 }
 0x14e   : > { %4338 = vmatprep.mubr.msk.f32.mxu0 %vm864_vm12, %v5222_v32 }
 0x151   : > { %4339 = vmatmul.mubr.msk.f32.vlgmr.msra.gmra.mrb[38].mxu0 %vm864_vm12, %v5227_v42 }
 0x152   : > { %4341 = vmatprep.mubr.msk.f32.mxu0 %vm864_vm12, %v5248_v51 }
 0x155   : > { %4342 = vmatmul.mubr.msk.f32.gmra.mrb[2].mxu0 %vm864_vm12, %v5253_v54 }
 0x156   : > { %4344 = vmatprep.mubr.msk.f32.mxu0 %vm864_vm12, %v5266_v60 }
 0x159   : > { %4345 = vmatmul.mubr.msk.f32.gmra.mrb[4].mxu0 %vm864_vm12, %v5271_v17 }
 0x15a   : > { %4347 = vmatprep.mubr.msk.f32.mxu0 %vm864_vm12, %v5284_v1 }
 0x15d   : > { %4348 = vmatmul.mubr.msk.f32.gmra.mrb[6].mxu0 %vm864_vm12, %v5289_v20 }
 0x15e   : > { %4350 = vmatprep.mubr.msk.f32.mxu0 %vm864_vm12, %v5302_v15 }
 0x15f   : > { %v4224_v32 = vpop.f32.mrb[0].mxu0 }
 0x160   : > { %v1043_v42 = vpop.f32.mrb[1].mxu0 }
 0x161   : > { %4351 = vmatmul.mubr.msk.f32.gmra.mrb[8].mxu0 %vm864_vm12, %v5307_v23 }
 0x162   : > { %4353 = vmatprep.mubr.msk.f32.mxu0 %vm864_vm12, %v5320_v33  ;;  %v2127_v33 = vpop.permute.xlu1 %2126 }
 0x163   : > { %2233 = vst.msk [vmem:[#allocation2 + $0x8] sm:$0xff] %vm237_vm4, %v2127_v33 }
 0x165   : > { %4354 = vmatmul.mubr.msk.f32.gmra.mrb[10].mxu0 %vm864_vm12, %v5325_v26 }
 0x166   : > { %4356 = vmatprep.mubr.msk.f32.mxu0 %vm864_vm12, %v5338_v45 }
 0x169   : > { %4357 = vmatmul.mubr.msk.f32.gmra.mrb[12].mxu0 %vm864_vm12, %v5343_v29 }
 0x16a   : > { %4359 = vmatprep.mubr.msk.f32.mxu0 %vm864_vm12, %v5356_v57 }
 0x16d   : > { %4360 = vmatmul.mubr.msk.f32.gmra.mrb[14].mxu0 %vm864_vm12, %v5361_v35 }
 0x16e   : > { %4362 = vmatprep.mubr.msk.f32.mxu0 %vm864_vm12, %v5374_v62 }
 0x171   : > { %4363 = vmatmul.mubr.msk.f32.gmra.mrb[16].mxu0 %vm864_vm12, %v5379_v38 }
 0x172   : > { %4365 = vmatprep.mubr.msk.f32.mxu0 %vm864_vm12, %v5392_v8 }
 0x175   : > { %4366 = vmatmul.mubr.msk.f32.gmra.mrb[18].mxu0 %vm864_vm12, %v5397_v41 }
 0x176   : > { %4368 = vmatprep.mubr.msk.f32.mxu0 %vm864_vm12, %v5410_v27  ;;  %v3895_v27 = vld [vmem:[%s6510_s2 + $0x10] sm:$0xff] }
 0x179   : > { %4369 = vmatmul.mubr.msk.f32.gmra.mrb[20].mxu0 %vm864_vm12, %v5415_v44  ;;  %v3896_v44 = vld [vmem:[%s6510_s2 + $0x18] sm:$0xf] }
 0x17a   : > { %4371 = vmatprep.mubr.msk.f32.mxu0 %vm864_vm12, %v5428_v10 }
 0x17d   : > { %4372 = vmatmul.mubr.msk.f32.gmra.mrb[22].mxu0 %vm864_vm12, %v5433_v47  ;;  %v4566_v47 = vpack.c.bf16 %v3896_v44, %v3895_v27 }
 0x17e   : > { %4374 = vmatprep.mubr.msk.f32.mxu0 %vm864_vm12, %v5446_v14 }
 0x17f   : > { %4568 = vmatprep.subr.msk.bf16.mxu1 %vm4860_vm2, %v4566_v47 }
 0x180   : > { %4571 = vmatpush3.bf16.msk.msra.mxu1 %vm4860_vm2, %v4566_v47 }
 0x181   : > { %4375 = vmatmul.mubr.msk.f32.gmra.mrb[24].mxu0 %vm864_vm12, %v5451_v50 }
 0x182   : > { %4377 = vmatprep.mubr.msk.f32.mxu0 %vm864_vm12, %v5469_v63 }
 0x185   : > { %4378 = vmatmul.mubr.msk.f32.gmra.mrb[26].mxu0 %vm864_vm12, %v5474_v40 }
 0x186   : > { %4380 = vmatprep.mubr.msk.f32.mxu0 %vm864_vm12, %v5495_v9 }
 0x189   : > { %4381 = vmatmul.mubr.msk.f32.gmra.mrb[28].mxu0 %vm864_vm12, %v5503_v30 }
 0x18a   : > { %4383 = vmatprep.mubr.msk.f32.mxu0 %vm864_vm12, %v5515_v36 }
 0x18d   : > { %4384 = vmatmul.mubr.msk.f32.gmra.mrb[32].mxu0 %vm864_vm12, %v5517_v28 }
 0x18e   : > { %4386 = vmatprep.mubr.msk.f32.mxu0 %vm864_vm12, %v5542_v49 }
 0x191   : > { %4387 = vmatmul.mubr.msk.f32.gmra.mrb[34].mxu0 %vm864_vm12, %v5546_v13 }
 0x1dc   : > { %v4282_v51 = vpop.f32.mrb[30].mxu0 }
 0x1dd   : > { %v1297_v54 = vpop.f32.mrb[31].mxu0 }
 0x1e1   : > { %v5672_v60 = vpop.f32.mrb[0].mxu1 }
 0x1e2   : > { %v5674_v17 = vpop.f32.mrb[1].mxu1 }
 0x1e5   : > { %v5676_v1 = vpop.f32.mrb[2].mxu1 }
 0x1e6   : > { %v5678_v20 = vpop.f32.mrb[3].mxu1 }
 0x1ef   : > { %v4275_v15 = vpop.f32.mrb[4].mxu1 }
 0x1f0   : > { %v1213_v23 = vpop.f32.mrb[5].mxu1 }
 0x220   : > { %v4333_v26 = vpop.f32.mrb[36].mxu0 }
 0x221   : > { %v1467_v45 = vpop.f32.mrb[37].mxu0 }
 0x224   : > { %v4340_v29 = vpop.f32.mrb[38].mxu0 }
 0x225   : > { %v1692_v57 = vpop.f32.mrb[39].mxu0 }
 0x228   : > { %v4343_v35 = vpop.f32.mrb[2].mxu0 }
 0x229   : > { %v5681_v62 = vmax.f32 %v4343_v35, 0.0  ;;  %v1702_v38 = vpop.f32.mrb[3].mxu0 }
 0x22a   : > { %v5683_v8 = vmax.f32 %v1702_v38, 0.0 }
 0x22b   : > { %2130 = vrot.lane.b32.xlu1 %v5681_v62, %s4808_s21 }
 0x22c   : > { %2128 = vrot.lane.b32.xlu0 %v5683_v8, %s4808_s21  ;;  %v4346_v41 = vpop.f32.mrb[4].mxu0  ;;  %v2343_v48 = vsel %vm260_vm3, 0.0, %v5683_v8 }
 0x22d   : > { %v1712_v10 = vpop.f32.mrb[5].mxu0  ;;  %v5705_v14 = vmax.f32 %v4346_v41, 0.0 }
 0x22e   : > { %v5707_v50 = vmax.f32 %v1712_v10, 0.0 }
 0x22f   : > { %2419 = vrot.lane.b32.xlu1 %v5681_v62, %s4807_s20 }
 0x230   : > { %2417 = vrot.lane.b32.xlu0 %v2343_v48, %s4807_s20  ;;  %v4349_v34 = vpop.f32.mrb[6].mxu0  ;;  %v2345_v58 = vsel %vm260_vm3, 0.0, %v5707_v50 }
 0x231   : > { %v1722_v53 = vpop.f32.mrb[7].mxu0  ;;  %v5719_v59 = vmax.f32 %v4349_v34, 0.0 }
 0x232   : > { %v5721_v19 = vmax.f32 %v1722_v53, 0.0 }
 0x233   : > { %2134 = vrot.lane.b32.xlu1 %v5705_v14, %s4808_s21 }
 0x234   : > { %2132 = vrot.lane.b32.xlu0 %v5707_v50, %s4808_s21  ;;  %v4352_v16 = vpop.f32.mrb[8].mxu0  ;;  %v2347_v0 = vsel %vm260_vm3, 0.0, %v5721_v19 }
 0x235   : > { %v1732_v52 = vpop.f32.mrb[9].mxu0  ;;  %v5733_v12 = vmax.f32 %v4352_v16, 0.0 }
 0x236   : > { %v5735_v22 = vmax.f32 %v1732_v52, 0.0 }
 0x237   : > { %2423 = vrot.lane.b32.xlu1 %v5705_v14, %s4807_s20 }
 0x238   : > { %2421 = vrot.lane.b32.xlu0 %v2345_v58, %s4807_s20  ;;  %v4355_v37 = vpop.f32.mrb[10].mxu0  ;;  %v2349_v43 = vsel %vm260_vm3, 0.0, %v5735_v22 }
 0x239   : > { %v1742_v61 = vpop.f32.mrb[11].mxu0  ;;  %v5747_v9 = vmax.f32 %v4355_v37, 0.0 }
 0x23a   : > { %v5749_v30 = vmax.f32 %v1742_v61, 0.0 }
 0x23b   : > { %2427 = vrot.lane.b32.xlu1 %v5719_v59, %s4807_s20 }
 0x23c   : > { %2138 = vrot.lane.b32.xlu0 %v5719_v59, %s4808_s21  ;;  %v4358_v63 = vpop.f32.mrb[12].mxu0  ;;  %v2351_v46 = vsel %vm260_vm3, 0.0, %v5749_v30 }
 0x23d   : > { %v1752_v40 = vpop.f32.mrb[13].mxu0  ;;  %v5761_v31 = vmax.f32 %v4358_v63, 0.0 }
 0x23e   : > { %v5763_v28 = vmax.f32 %v1752_v40, 0.0 }
 0x23f   : > { %2136 = vrot.lane.b32.xlu1 %v5721_v19, %s4808_s21 }
 0x240   : > { %2425 = vrot.lane.b32.xlu0 %v2347_v0, %s4807_s20  ;;  %v4361_v55 = vpop.f32.mrb[14].mxu0  ;;  %v2353_v13 = vsel %vm260_vm3, 0.0, %v5763_v28 }
 0x241   : > { %v1762_v2 = vpop.f32.mrb[15].mxu0  ;;  %v5775_v42 = vmax.f32 %v4361_v55, 0.0 }
 0x242   : > { %v5777_v54 = vmax.f32 %v1762_v2, 0.0 }
 0x243   : > { %2431 = vrot.lane.b32.xlu1 %v5733_v12, %s4807_s20 }
 0x244   : > { %2142 = vrot.lane.b32.xlu0 %v5733_v12, %s4808_s21  ;;  %v4364_v7 = vpop.f32.mrb[16].mxu0  ;;  %v2355_v33 = vsel %vm260_vm3, 0.0, %v5777_v54 }
 0x245   : > { %v1772_v4 = vpop.f32.mrb[17].mxu0  ;;  %v5789_v45 = vmax.f32 %v4364_v7, 0.0 }
 0x246   : > { %v5793_v38 = vmax.f32 %v1772_v4, 0.0 }
 0x247   : > { %2140 = vrot.lane.b32.xlu1 %v5735_v22, %s4808_s21 }
 0x248   : > { %2429 = vrot.lane.b32.xlu0 %v2349_v43, %s4807_s20  ;;  %v4367_v11 = vpop.f32.mrb[18].mxu0 }
 0x249   : > { %v1782_v25 = vpop.f32.mrb[19].mxu0 }
 0x24a   : > { %v5811_v47 = vmax.f32 %v1782_v25, 0.0 }
 0x24b   : > { %2435 = vrot.lane.b32.xlu1 %v5747_v9, %s4807_s20 }
 0x24c   : > { %2146 = vrot.lane.b32.xlu0 %v5747_v9, %s4808_s21  ;;  %v4370_v18 = vpop.f32.mrb[20].mxu0  ;;  %v2359_v34 = vsel %vm260_vm3, 0.0, %v5811_v47 }
 0x24d   : > { %v1792_v24 = vpop.f32.mrb[21].mxu0  ;;  %v5834_v53 = vmax.f32 %v4370_v18, 0.0 }
 0x24e   : > { %v5836_v16 = vmax.f32 %v1792_v24, 0.0 }
 0x24f   : > { %2144 = vrot.lane.b32.xlu1 %v5749_v30, %s4808_s21 }
 0x250   : > { %2433 = vrot.lane.b32.xlu0 %v2351_v46, %s4807_s20  ;;  %v4373_v21 = vpop.f32.mrb[22].mxu0  ;;  %v2361_v52 = vsel %vm260_vm3, 0.0, %v5836_v16 }
 0x251   : > { %v1802_v36 = vpop.f32.mrb[23].mxu0  ;;  %v5848_v58 = vmax.f32 %v4373_v21, 0.0 }
 0x252   : > { %v5850_v37 = vmax.f32 %v1802_v36, 0.0 }
 0x253   : > { %2439 = vrot.lane.b32.xlu1 %v5761_v31, %s4807_s20 }
 0x254   : > { %2150 = vrot.lane.b32.xlu0 %v5761_v31, %s4808_s21  ;;  %v4376_v39 = vpop.f32.mrb[24].mxu0  ;;  %v2363_v61 = vsel %vm260_vm3, 0.0, %v5850_v37 }
 0x255   : > { %v1812_v49 = vpop.f32.mrb[25].mxu0  ;;  %v5862_v63 = vmax.f32 %v4376_v39, 0.0 }
 0x256   : > { %v5864_v40 = vmax.f32 %v1812_v49, 0.0 }
 0x257   : > { %2148 = vrot.lane.b32.xlu1 %v5763_v28, %s4808_s21 }
 0x258   : > { %2437 = vrot.lane.b32.xlu0 %v2353_v13, %s4807_s20  ;;  %v4379_v32 = vpop.f32.mrb[26].mxu0  ;;  %v2365_v0 = vsel %vm260_vm3, 0.0, %v5864_v40 }
 0x259   : > { %v1822_v51 = vpop.f32.mrb[27].mxu0  ;;  %v5876_v55 = vmax.f32 %v4379_v32, 0.0 }
 0x25a   : > { %v5878_v2 = vmax.f32 %v1822_v51, 0.0  ;;  %v2271_v51 = vsel %vm243_vm10, 0.0, %v5681_v62 }
 0x25b   : > { %2443 = vrot.lane.b32.xlu1 %v5775_v42, %s4807_s20 }
 0x25c   : > { %2154 = vrot.lane.b32.xlu0 %v5775_v42, %s4808_s21  ;;  %v4382_v15 = vpop.f32.mrb[28].mxu0  ;;  %v2367_v7 = vsel %vm260_vm3, 0.0, %v5878_v2 }
 0x25d   : > { %v1832_v23 = vpop.f32.mrb[29].mxu0  ;;  %v5890_v4 = vmax.f32 %v4382_v15, 0.0 }
 0x25e   : > { %v5892_v43 = vmax.f32 %v1832_v23, 0.0 }
 0x25f   : > { %2152 = vrot.lane.b32.xlu1 %v5777_v54, %s4808_s21 }
 0x260   : > { %2441 = vrot.lane.b32.xlu0 %v2355_v33, %s4807_s20  ;;  %v4385_v26 = vpop.f32.mrb[32].mxu0 }
 0x261   : > { %v4586_v29 = vadd.f32 %v4385_v26, %v5672_v60  ;;  %v1842_v57 = vpop.f32.mrb[33].mxu0  ;;  %v2357_v60 = vsel %vm260_vm3, 0.0, %v5793_v38  ;;  %v3964_v26 = vld [vmem:[%s6510_s2 + $0x28] sm:$0xf] }
 0x262   : > { %v4587_v35 = vadd.f32 %v1842_v57, %v5674_v17  ;;  %v5809_v17 = vmax.f32 %v4367_v11, 0.0  ;;  %v2369_v11 = vsel %vm260_vm3, 0.0, %v5892_v43 }
 0x263   : > { %2447 = vrot.lane.b32.xlu1 %v5789_v45, %s4807_s20  ;;  %v5904_v25 = vmax.f32 %v4586_v29, 0.0 }
 0x264   : > { %2158 = vrot.lane.b32.xlu0 %v5789_v45, %s4808_s21  ;;  %v4388_v41 = vpop.f32.mrb[34].mxu0  ;;  %v5906_v18 = vmax.f32 %v4587_v35, 0.0 }
 0x265   : > { %v5800_v27 = vadd.f32 %v4388_v41, %v5676_v1  ;;  %v1852_v44 = vpop.f32.mrb[35].mxu0  ;;  %v2590_v1 = vld [vmem:[%s6510_s2] sm:$0xff]  ;;  %v2273_v41 = vsel %vm243_vm10, 0.0, %v5705_v14 }
 0x266   : > { %v4589_v10 = vadd.f32 %v1852_v44, %v5678_v20  ;;  %v2591_v20 = vld [vmem:[%s6510_s2 + $0x8] sm:$0xf]  ;;  %v2371_v21 = vsel %vm260_vm3, 0.0, %v5906_v18 }
 0x267   : > { %2156 = vrot.lane.b32.xlu1 %v5793_v38, %s4808_s21  ;;  %v5823_v48 = vpack.c.bf16 %v2591_v20, %v2590_v1  ;;  %v5927_v49 = vmax.f32 %v5800_v27, 0.0 }
 0x268   : > { %2445 = vrot.lane.b32.xlu0 %v2357_v60, %s4807_s20  ;;  %v5924_v36 = vmax.f32 %v4589_v10, 0.0  ;;  %v2275_v60 = vsel %vm243_vm10, 0.0, %v5719_v59 }
 0x269   : > { %4574 = vmatprep.subr.msk.bf16.mxu1 %vm4860_vm2, %v5823_v48 }
 0x26a   : > { %v2373_v15 = vsel %vm260_vm3, 0.0, %v5924_v36 }
 0x26b   : > { %2451 = vrot.lane.b32.xlu1 %v5809_v17, %s4807_s20 }
 0x26c   : > { %2162 = vrot.lane.b32.xlu0 %v5809_v17, %s4808_s21 }
 0x26f   : > { %2160 = vrot.lane.b32.xlu1 %v5811_v47, %s4808_s21 }
 0x270   : > { %2449 = vrot.lane.b32.xlu0 %v2359_v34, %s4807_s20 }
 0x273   : > { %2455 = vrot.lane.b32.xlu1 %v5834_v53, %s4807_s20 }
 0x274   : > { %2166 = vrot.lane.b32.xlu0 %v5834_v53, %s4808_s21 }
 0x277   : > { %2164 = vrot.lane.b32.xlu1 %v5836_v16, %s4808_s21 }
 0x278   : > { %2453 = vrot.lane.b32.xlu0 %v2361_v52, %s4807_s20 }
 0x27b   : > { %2459 = vrot.lane.b32.xlu1 %v5848_v58, %s4807_s20 }
 0x27c   : > { %2170 = vrot.lane.b32.xlu0 %v5848_v58, %s4808_s21 }
 0x27f   : > { %2168 = vrot.lane.b32.xlu1 %v5850_v37, %s4808_s21 }
 0x280   : > { %2457 = vrot.lane.b32.xlu0 %v2363_v61, %s4807_s20 }
 0x283   : > { %2463 = vrot.lane.b32.xlu1 %v5862_v63, %s4807_s20 }
 0x284   : > { %2174 = vrot.lane.b32.xlu0 %v5862_v63, %s4808_s21 }
 0x287   : > { %2172 = vrot.lane.b32.xlu1 %v5864_v40, %s4808_s21 }
 0x288   : > { %2461 = vrot.lane.b32.xlu0 %v2365_v0, %s4807_s20 }
 0x28b   : > { %2467 = vrot.lane.b32.xlu1 %v5876_v55, %s4807_s20 }
 0x28c   : > { %2178 = vrot.lane.b32.xlu0 %v5876_v55, %s4808_s21 }
 0x28f   : > { %2176 = vrot.lane.b32.xlu1 %v5878_v2, %s4808_s21 }
 0x290   : > { %2465 = vrot.lane.b32.xlu0 %v2367_v7, %s4807_s20 }
 0x293   : > { %2471 = vrot.lane.b32.xlu1 %v5890_v4, %s4807_s20 }
 0x294   : > { %2182 = vrot.lane.b32.xlu0 %v5890_v4, %s4808_s21 }
 0x297   : > { %2180 = vrot.lane.b32.xlu1 %v5892_v43, %s4808_s21 }
 0x298   : > { %2469 = vrot.lane.b32.xlu0 %v2369_v11, %s4807_s20 }
 0x29b   : > { %2475 = vrot.lane.b32.xlu1 %v5904_v25, %s4807_s20 }
 0x29c   : > { %2186 = vrot.lane.b32.xlu0 %v5904_v25, %s4808_s21 }
 0x29d   : > { %v2131_v24 = vpop.permute.xlu1 %2130 }
 0x29e   : > { %2235 = vst.msk [vmem:[#allocation2 + $0x18] sm:$0xff] %vm237_vm4, %v2131_v24  ;;  %v2129_v46 = vpop.permute.xlu0 %2128 }
 0x29f   : > { %2234 = vst.msk [vmem:[#allocation2 + $0x10] sm:$0xff] %vm237_vm4, %v2129_v46  ;;  %2184 = vrot.lane.b32.xlu1 %v5906_v18, %s4808_s21 }
 0x2a0   : > { %2305 = vst.msk [vmem:[#allocation2 + $0x9] sm:$0xff] %vm252_vm5, %v4806_v3  ;;  %2306 = vst.msk [vmem:[#allocation2 + $0x11] sm:$0xff] %vm252_vm5, %v5683_v8  ;;  %2473 = vrot.lane.b32.xlu0 %v2371_v21, %s4807_s20 }
 0x2a1   : > { %v2420_v39 = vpop.permute.xlu1 %2419 }
 0x2a2   : > { %v2418_v13 = vpop.permute.xlu0 %2417 }
 0x2a3   : > { %2523 = vst.msk [vmem:[#allocation2 + $0xf] sm:$0xff] %vm288_vm7, %v2418_v13  ;;  %2188 = vrot.lane.b32.xlu1 %v5924_v36, %s4808_s21 }
 0x2a4   : > { %2190 = vrot.lane.b32.xlu0 %v5927_v49, %s4808_s21 }
 0x2a5   : > { %v2135_v32 = vpop.permute.xlu1 %2134 }
 0x2a6   : > { %2237 = vst.msk [vmem:[#allocation2 + $0x28] sm:$0xff] %vm237_vm4, %v2135_v32  ;;  %v2133_v8 = vpop.permute.xlu0 %2132 }
 0x2a7   : > { %2236 = vst.msk [vmem:[#allocation2 + $0x20] sm:$0xff] %vm237_vm4, %v2133_v8  ;;  %4773 = vrot.lane.b32.xlu1 %v4806_v3, %s4808_s21 }
 0x2a8   : > { %2307 = vst.msk [vmem:[#allocation2 + $0x19] sm:$0xff] %vm252_vm5, %v2271_v51  ;;  %2308 = vst.msk [vmem:[#allocation2 + $0x21] sm:$0xff] %vm252_vm5, %v5707_v50  ;;  %2477 = vrot.lane.b32.xlu0 %v2373_v15, %s4807_s20  ;;  %v3963_v50 = vld [vmem:[%s6510_s2 + $0x20] sm:$0xff] }
 0x2a9   : > { %2524 = vst.msk [vmem:[#allocation2 + $0x17] sm:$0xff] %vm288_vm7, %v2420_v39  ;;  %v2424_v23 = vpop.permute.xlu1 %2423  ;;  %v5969_v35 = vpack.c.bf16 %v3964_v26, %v3963_v50 }
 0x2aa   : > { %v2422_v62 = vpop.permute.xlu0 %2421 }
 0x2ab   : > { %2525 = vst.msk [vmem:[#allocation2 + $0x1f] sm:$0xff] %vm288_vm7, %v2422_v62  ;;  %4778 = vrot.lane.b32.xlu1 %v4806_v3, %s4807_s20 }
 0x2ac   : > { %2479 = vrot.lane.b32.xlu0 %v5927_v49, %s4807_s20 }
 0x2ad   : > { %v2428_v6 = vpop.permute.xlu1 %2427 }
 0x2ae   : > { %v2139_v33 = vpop.permute.xlu0 %2138 }
 0x2af   : > { %2239 = vst.msk [vmem:[#allocation2 + $0x38] sm:$0xff] %vm237_vm4, %v2139_v33  ;;  %2415 = vrot.lane.b32.xlu1 %v4806_v3, %s4807_s20 }
 0x2b0   : > { %2124 = vrot.lane.b32.xlu0 %v4806_v3, %s4808_s21  ;;  %v5965_v29 = vld [vmem:[#allocation2 + $0x10] sm:$0xff] }
 0x2b1   : > { %4396 = vmatprep.mubr.msk.f32.mxu1 %vm864_vm12, %v5965_v29  ;;  %v2137_v57 = vpop.permute.xlu1 %2136 }
 0x2b2   : > { %2238 = vst.msk [vmem:[#allocation2 + $0x30] sm:$0xff] %vm237_vm4, %v2137_v57  ;;  %v2426_v27 = vpop.permute.xlu0 %2425  ;;  %v5975_v44 = vld [vmem:[#allocation2 + $0x18] sm:$0xff] }
 0x2b3   : > { %2309 = vst.msk [vmem:[#allocation2 + $0x29] sm:$0xff] %vm252_vm5, %v2273_v41  ;;  %2310 = vst.msk [vmem:[#allocation2 + $0x31] sm:$0xff] %vm252_vm5, %v5721_v19  ;;  %4397 = vmatmul.mubr.msk.f32.vlgmr.msra.gmra.mrb[6].mxu1 %vm864_vm12, %v5975_v44  ;;  %810 = vrot.lane.b32.xlu1 %v4806_v3, %s4807_s20 }
 0x2b4   : > { %2526 = vst.msk [vmem:[#allocation2 + $0x27] sm:$0xff] %vm288_vm7, %v2424_v23  ;;  %2527 = vst.msk [vmem:[#allocation2 + $0x2f] sm:$0xff] %vm288_vm7, %v2426_v27  ;;  %2483 = vrot.lane.b32.xlu0 %v4806_v3, %s4807_s20  ;;  %4577 = vmatpush3.bf16.msk.msra.mxu1 %vm4860_vm2, %v5823_v48 }
 0x2b5   : > { %v2432_v14 = vpop.permute.xlu1 %2431  ;;  %4580 = vmatprep.subr.msk.bf16.mxu1 %vm4860_vm2, %v5969_v35 }
 0x2b6   : > { %v2143_v19 = vpop.permute.xlu0 %2142 }
 0x2b7   : > { %2241 = vst.msk [vmem:[#allocation2 + $0x48] sm:$0xff] %vm237_vm4, %v2143_v19 }
 0x2b9   : > { %v2141_v10 = vpop.permute.xlu1 %2140 }
 0x2ba   : > { %2240 = vst.msk [vmem:[#allocation2 + $0x40] sm:$0xff] %vm237_vm4, %v2141_v10  ;;  %v2430_v1 = vpop.permute.xlu0 %2429 }
 0x2bb   : > { %2311 = vst.msk [vmem:[#allocation2 + $0x39] sm:$0xff] %vm252_vm5, %v2275_v60  ;;  %2312 = vst.msk [vmem:[#allocation2 + $0x41] sm:$0xff] %vm252_vm5, %v5735_v22  ;;  %v6002_v20 = vld [vmem:[#allocation2 + $0x20] sm:$0xff]  ;;  %v6004_v48 = vld [vmem:[#allocation2 + $0x28] sm:$0xff]  ;;  %v2277_v22 = vsel %vm243_vm10, 0.0, %v5733_v12 }
 0x2bc   : > { %2528 = vst.msk [vmem:[#allocation2 + $0x37] sm:$0xff] %vm288_vm7, %v2428_v6  ;;  %2529 = vst.msk [vmem:[#allocation2 + $0x3f] sm:$0xff] %vm288_vm7, %v2430_v1  ;;  %4399 = vmatprep.mubr.msk.f32.mxu1 %vm864_vm12, %v6002_v20 }
 0x2bd   : > { %4400 = vmatmul.mubr.msk.f32.gmra.mrb[8].mxu1 %vm864_vm12, %v6004_v48  ;;  %v2436_v59 = vpop.permute.xlu1 %2435 }
 0x2be   : > { %v2147_v34 = vpop.permute.xlu0 %2146 }
 0x2bf   : > { %2243 = vst.msk [vmem:[#allocation2 + $0x58] sm:$0xff] %vm237_vm4, %v2147_v34 }
 0x2c1   : > { %v2145_v52 = vpop.permute.xlu1 %2144 }
 0x2c2   : > { %2242 = vst.msk [vmem:[#allocation2 + $0x50] sm:$0xff] %vm237_vm4, %v2145_v52  ;;  %v2434_v61 = vpop.permute.xlu0 %2433 }
 0x2c3   : > { %2313 = vst.msk [vmem:[#allocation2 + $0x49] sm:$0xff] %vm252_vm5, %v2277_v22  ;;  %2314 = vst.msk [vmem:[#allocation2 + $0x51] sm:$0xff] %vm252_vm5, %v5749_v30  ;;  %v6020_v0 = vld [vmem:[#allocation2 + $0x30] sm:$0xff]  ;;  %v6022_v7 = vld [vmem:[#allocation2 + $0x38] sm:$0xff]  ;;  %v2279_v30 = vsel %vm243_vm10, 0.0, %v5747_v9 }
 0x2c4   : > { %2530 = vst.msk [vmem:[#allocation2 + $0x47] sm:$0xff] %vm288_vm7, %v2432_v14  ;;  %2531 = vst.msk [vmem:[#allocation2 + $0x4f] sm:$0xff] %vm288_vm7, %v2434_v61  ;;  %4402 = vmatprep.mubr.msk.f32.mxu1 %vm864_vm12, %v6020_v0 }
 0x2c5   : > { %4403 = vmatmul.mubr.msk.f32.gmra.mrb[10].mxu1 %vm864_vm12, %v6022_v7  ;;  %v2440_v12 = vpop.permute.xlu1 %2439 }
 0x2c6   : > { %v2151_v11 = vpop.permute.xlu0 %2150 }
 0x2c7   : > { %2245 = vst.msk [vmem:[#allocation2 + $0x68] sm:$0xff] %vm237_vm4, %v2151_v11 }
 0x2c9   : > { %v2149_v24 = vpop.permute.xlu1 %2148 }
 0x2ca   : > { %2244 = vst.msk [vmem:[#allocation2 + $0x60] sm:$0xff] %vm237_vm4, %v2149_v24  ;;  %v2438_v46 = vpop.permute.xlu0 %2437 }
 0x2cb   : > { %2315 = vst.msk [vmem:[#allocation2 + $0x59] sm:$0xff] %vm252_vm5, %v2279_v30  ;;  %2316 = vst.msk [vmem:[#allocation2 + $0x61] sm:$0xff] %vm252_vm5, %v5763_v28  ;;  %v6038_v21 = vld [vmem:[#allocation2 + $0x40] sm:$0xff]  ;;  %v6040_v39 = vld [vmem:[#allocation2 + $0x48] sm:$0xff]  ;;  %v2281_v28 = vsel %vm243_vm10, 0.0, %v5761_v31 }
 0x2cc   : > { %2532 = vst.msk [vmem:[#allocation2 + $0x57] sm:$0xff] %vm288_vm7, %v2436_v59  ;;  %2533 = vst.msk [vmem:[#allocation2 + $0x5f] sm:$0xff] %vm288_vm7, %v2438_v46  ;;  %4405 = vmatprep.mubr.msk.f32.mxu1 %vm864_vm12, %v6038_v21 }
 0x2cd   : > { %4406 = vmatmul.mubr.msk.f32.gmra.mrb[12].mxu1 %vm864_vm12, %v6040_v39  ;;  %v2444_v9 = vpop.permute.xlu1 %2443 }
 0x2ce   : > { %v2155_v13 = vpop.permute.xlu0 %2154 }
 0x2cf   : > { %2247 = vst.msk [vmem:[#allocation2 + $0x78] sm:$0xff] %vm237_vm4, %v2155_v13 }
 0x2d1   : > { %v2153_v32 = vpop.permute.xlu1 %2152 }
 0x2d2   : > { %2246 = vst.msk [vmem:[#allocation2 + $0x70] sm:$0xff] %vm237_vm4, %v2153_v32  ;;  %v2442_v8 = vpop.permute.xlu0 %2441 }
 0x2d3   : > { %2317 = vst.msk [vmem:[#allocation2 + $0x69] sm:$0xff] %vm252_vm5, %v2281_v28  ;;  %2318 = vst.msk [vmem:[#allocation2 + $0x71] sm:$0xff] %vm252_vm5, %v5777_v54  ;;  %v6056_v51 = vld [vmem:[#allocation2 + $0x50] sm:$0xff]  ;;  %v6058_v15 = vld [vmem:[#allocation2 + $0x58] sm:$0xff]  ;;  %v2283_v54 = vsel %vm243_vm10, 0.0, %v5775_v42 }
 0x2d4   : > { %2534 = vst.msk [vmem:[#allocation2 + $0x67] sm:$0xff] %vm288_vm7, %v2440_v12  ;;  %2535 = vst.msk [vmem:[#allocation2 + $0x6f] sm:$0xff] %vm288_vm7, %v2442_v8  ;;  %4408 = vmatprep.mubr.msk.f32.mxu1 %vm864_vm12, %v6056_v51 }
 0x2d5   : > { %4409 = vmatmul.mubr.msk.f32.gmra.mrb[14].mxu1 %vm864_vm12, %v6058_v15  ;;  %v2448_v31 = vpop.permute.xlu1 %2447 }
 0x2d6   : > { %v2159_v23 = vpop.permute.xlu0 %2158 }
 0x2d7   : > { %2249 = vst.msk [vmem:[#allocation2 + $0x88] sm:$0xff] %vm237_vm4, %v2159_v23 }
 0x2d9   : > { %v2157_v62 = vpop.permute.xlu1 %2156 }
 0x2da   : > { %2248 = vst.msk [vmem:[#allocation2 + $0x80] sm:$0xff] %vm237_vm4, %v2157_v62  ;;  %v2446_v6 = vpop.permute.xlu0 %2445 }
 0x2db   : > { %2319 = vst.msk [vmem:[#allocation2 + $0x79] sm:$0xff] %vm252_vm5, %v2283_v54  ;;  %2320 = vst.msk [vmem:[#allocation2 + $0x81] sm:$0xff] %vm252_vm5, %v5793_v38  ;;  %v6074_v33 = vld [vmem:[#allocation2 + $0x60] sm:$0xff]  ;;  %v6076_v50 = vld [vmem:[#allocation2 + $0x68] sm:$0xff]  ;;  %v2285_v38 = vsel %vm243_vm10, 0.0, %v5789_v45 }
 0x2dc   : > { %2536 = vst.msk [vmem:[#allocation2 + $0x77] sm:$0xff] %vm288_vm7, %v2444_v9  ;;  %2537 = vst.msk [vmem:[#allocation2 + $0x7f] sm:$0xff] %vm288_vm7, %v2446_v6  ;;  %4411 = vmatprep.mubr.msk.f32.mxu1 %vm864_vm12, %v6074_v33 }
 0x2dd   : > { %4412 = vmatmul.mubr.msk.f32.gmra.mrb[16].mxu1 %vm864_vm12, %v6076_v50  ;;  %v2452_v42 = vpop.permute.xlu1 %2451 }
 0x2de   : > { %v2163_v26 = vpop.permute.xlu0 %2162 }
 0x2df   : > { %2251 = vst.msk [vmem:[#allocation2 + $0x98] sm:$0xff] %vm237_vm4, %v2163_v26 }
 0x2e1   : > { %v2161_v57 = vpop.permute.xlu1 %2160 }
 0x2e2   : > { %2250 = vst.msk [vmem:[#allocation2 + $0x90] sm:$0xff] %vm237_vm4, %v2161_v57  ;;  %v2450_v41 = vpop.permute.xlu0 %2449 }
 0x2e3   : > { %2321 = vst.msk [vmem:[#allocation2 + $0x89] sm:$0xff] %vm252_vm5, %v2285_v38  ;;  %2322 = vst.msk [vmem:[#allocation2 + $0x91] sm:$0xff] %vm252_vm5, %v5811_v47  ;;  %v6092_v27 = vld [vmem:[#allocation2 + $0x70] sm:$0xff]  ;;  %v6094_v14 = vld [vmem:[#allocation2 + $0x78] sm:$0xff]  ;;  %v2287_v47 = vsel %vm243_vm10, 0.0, %v5809_v17 }
 0x2e4   : > { %2538 = vst.msk [vmem:[#allocation2 + $0x87] sm:$0xff] %vm288_vm7, %v2448_v31  ;;  %2539 = vst.msk [vmem:[#allocation2 + $0x8f] sm:$0xff] %vm288_vm7, %v2450_v41  ;;  %4414 = vmatprep.mubr.msk.f32.mxu1 %vm864_vm12, %v6092_v27 }
 0x2e5   : > { %4415 = vmatmul.mubr.msk.f32.gmra.mrb[18].mxu1 %vm864_vm12, %v6094_v14  ;;  %v2456_v45 = vpop.permute.xlu1 %2455 }
 0x2e6   : > { %v2167_v19 = vpop.permute.xlu0 %2166 }
 0x2e7   : > { %2253 = vst.msk [vmem:[#allocation2 + $0xa8] sm:$0xff] %vm237_vm4, %v2167_v19  ;;  %v2299_v19 = vsel %vm243_vm10, 0.0, %v5904_v25 }
 0x2e9   : > { %v2165_v10 = vpop.permute.xlu1 %2164 }
 0x2ea   : > { %2252 = vst.msk [vmem:[#allocation2 + $0xa0] sm:$0xff] %vm237_vm4, %v2165_v10  ;;  %v2454_v60 = vpop.permute.xlu0 %2453 }
 0x2eb   : > { %2323 = vst.msk [vmem:[#allocation2 + $0x99] sm:$0xff] %vm252_vm5, %v2287_v47  ;;  %2324 = vst.msk [vmem:[#allocation2 + $0xa1] sm:$0xff] %vm252_vm5, %v5836_v16  ;;  %v6110_v1 = vld [vmem:[#allocation2 + $0x80] sm:$0xff]  ;;  %v6112_v59 = vld [vmem:[#allocation2 + $0x88] sm:$0xff]  ;;  %v2289_v16 = vsel %vm243_vm10, 0.0, %v5834_v53 }
 0x2ec   : > { %2540 = vst.msk [vmem:[#allocation2 + $0x97] sm:$0xff] %vm288_vm7, %v2452_v42  ;;  %2541 = vst.msk [vmem:[#allocation2 + $0x9f] sm:$0xff] %vm288_vm7, %v2454_v60  ;;  %4417 = vmatprep.mubr.msk.f32.mxu1 %vm864_vm12, %v6110_v1 }
 0x2ed   : > { %4418 = vmatmul.mubr.msk.f32.gmra.mrb[20].mxu1 %vm864_vm12, %v6112_v59  ;;  %v2460_v17 = vpop.permute.xlu1 %2459 }
 0x2ee   : > { %v2171_v34 = vpop.permute.xlu0 %2170 }
 0x2ef   : > { %2255 = vst.msk [vmem:[#allocation2 + $0xb8] sm:$0xff] %vm237_vm4, %v2171_v34 }
 0x2f1   : > { %v2169_v52 = vpop.permute.xlu1 %2168 }
 0x2f2   : > { %2254 = vst.msk [vmem:[#allocation2 + $0xb0] sm:$0xff] %vm237_vm4, %v2169_v52  ;;  %v2458_v22 = vpop.permute.xlu0 %2457  ;;  %v2301_v52 = vsel %vm243_vm10, 0.0, %v5927_v49 }
 0x2f3   : > { %2325 = vst.msk [vmem:[#allocation2 + $0xa9] sm:$0xff] %vm252_vm5, %v2289_v16  ;;  %2326 = vst.msk [vmem:[#allocation2 + $0xb1] sm:$0xff] %vm252_vm5, %v5850_v37  ;;  %v6128_v61 = vld [vmem:[#allocation2 + $0x90] sm:$0xff]  ;;  %v6130_v12 = vld [vmem:[#allocation2 + $0x98] sm:$0xff]  ;;  %v2291_v37 = vsel %vm243_vm10, 0.0, %v5848_v58 }
 0x2f4   : > { %2542 = vst.msk [vmem:[#allocation2 + $0xa7] sm:$0xff] %vm288_vm7, %v2456_v45  ;;  %2543 = vst.msk [vmem:[#allocation2 + $0xaf] sm:$0xff] %vm288_vm7, %v2458_v22  ;;  %4420 = vmatprep.mubr.msk.f32.mxu1 %vm864_vm12, %v6128_v61 }
 0x2f5   : > { %4421 = vmatmul.mubr.msk.f32.gmra.mrb[22].mxu1 %vm864_vm12, %v6130_v12  ;;  %v2464_v53 = vpop.permute.xlu1 %2463 }
 0x2f6   : > { %v2175_v11 = vpop.permute.xlu0 %2174 }
 0x2f7   : > { %2257 = vst.msk [vmem:[#allocation2 + $0xc8] sm:$0xff] %vm237_vm4, %v2175_v11 }
 0x2f9   : > { %v2173_v24 = vpop.permute.xlu1 %2172 }
 0x2fa   : > { %2256 = vst.msk [vmem:[#allocation2 + $0xc0] sm:$0xff] %vm237_vm4, %v2173_v24  ;;  %v2462_v30 = vpop.permute.xlu0 %2461 }
 0x2fb   : > { %2327 = vst.msk [vmem:[#allocation2 + $0xb9] sm:$0xff] %vm252_vm5, %v2291_v37  ;;  %2328 = vst.msk [vmem:[#allocation2 + $0xc1] sm:$0xff] %vm252_vm5, %v5864_v40  ;;  %v6146_v46 = vld [vmem:[#allocation2 + $0xa0] sm:$0xff]  ;;  %v6148_v9 = vld [vmem:[#allocation2 + $0xa8] sm:$0xff]  ;;  %v2293_v40 = vsel %vm243_vm10, 0.0, %v5862_v63 }
 0x2fc   : > { %2544 = vst.msk [vmem:[#allocation2 + $0xb7] sm:$0xff] %vm288_vm7, %v2460_v17  ;;  %2545 = vst.msk [vmem:[#allocation2 + $0xbf] sm:$0xff] %vm288_vm7, %v2462_v30  ;;  %4423 = vmatprep.mubr.msk.f32.mxu1 %vm864_vm12, %v6146_v46 }
 0x2fd   : > { %4424 = vmatmul.mubr.msk.f32.gmra.mrb[24].mxu1 %vm864_vm12, %v6148_v9  ;;  %v2468_v58 = vpop.permute.xlu1 %2467 }
 0x2fe   : > { %v2179_v13 = vpop.permute.xlu0 %2178 }
 0x2ff   : > { %2259 = vst.msk [vmem:[#allocation2 + $0xd8] sm:$0xff] %vm237_vm4, %v2179_v13 }
 0x301   : > { %v2177_v32 = vpop.permute.xlu1 %2176 }
 0x302   : > { %2258 = vst.msk [vmem:[#allocation2 + $0xd0] sm:$0xff] %vm237_vm4, %v2177_v32  ;;  %v2466_v28 = vpop.permute.xlu0 %2465 }
 0x303   : > { %2329 = vst.msk [vmem:[#allocation2 + $0xc9] sm:$0xff] %vm252_vm5, %v2293_v40  ;;  %2330 = vst.msk [vmem:[#allocation2 + $0xd1] sm:$0xff] %vm252_vm5, %v5878_v2  ;;  %v6164_v8 = vld [vmem:[#allocation2 + $0xb0] sm:$0xff]  ;;  %v6166_v31 = vld [vmem:[#allocation2 + $0xb8] sm:$0xff]  ;;  %v2295_v2 = vsel %vm243_vm10, 0.0, %v5876_v55 }
 0x304   : > { %2546 = vst.msk [vmem:[#allocation2 + $0xc7] sm:$0xff] %vm288_vm7, %v2464_v53  ;;  %2547 = vst.msk [vmem:[#allocation2 + $0xcf] sm:$0xff] %vm288_vm7, %v2466_v28  ;;  %4426 = vmatprep.mubr.msk.f32.mxu1 %vm864_vm12, %v6164_v8 }
 0x305   : > { %4427 = vmatmul.mubr.msk.f32.gmra.mrb[26].mxu1 %vm864_vm12, %v6166_v31  ;;  %v2472_v63 = vpop.permute.xlu1 %2471 }
 0x306   : > { %v2183_v23 = vpop.permute.xlu0 %2182 }
 0x307   : > { %2261 = vst.msk [vmem:[#allocation2 + $0xe8] sm:$0xff] %vm237_vm4, %v2183_v23 }
 0x309   : > { %v2181_v62 = vpop.permute.xlu1 %2180 }
 0x30a   : > { %2260 = vst.msk [vmem:[#allocation2 + $0xe0] sm:$0xff] %vm237_vm4, %v2181_v62  ;;  %v2470_v54 = vpop.permute.xlu0 %2469 }
 0x30b   : > { %2331 = vst.msk [vmem:[#allocation2 + $0xd9] sm:$0xff] %vm252_vm5, %v2295_v2  ;;  %2332 = vst.msk [vmem:[#allocation2 + $0xe1] sm:$0xff] %vm252_vm5, %v5892_v43  ;;  %v6182_v6 = vld [vmem:[#allocation2 + $0xc0] sm:$0xff]  ;;  %v6184_v42 = vld [vmem:[#allocation2 + $0xc8] sm:$0xff]  ;;  %v2297_v43 = vsel %vm243_vm10, 0.0, %v5890_v4 }
 0x30c   : > { %2548 = vst.msk [vmem:[#allocation2 + $0xd7] sm:$0xff] %vm288_vm7, %v2468_v58  ;;  %2549 = vst.msk [vmem:[#allocation2 + $0xdf] sm:$0xff] %vm288_vm7, %v2470_v54  ;;  %4429 = vmatprep.mubr.msk.f32.mxu1 %vm864_vm12, %v6182_v6 }
 0x30d   : > { %4430 = vmatmul.mubr.msk.f32.gmra.mrb[28].mxu1 %vm864_vm12, %v6184_v42  ;;  %v2476_v55 = vpop.permute.xlu1 %2475 }
 0x30e   : > { %v2187_v26 = vpop.permute.xlu0 %2186 }
 0x30f   : > { %2263 = vst.msk [vmem:[#allocation2 + $0xf8] sm:$0xff] %vm237_vm4, %v2187_v26  ;;  %v3584_v26 = vld [vmem:[%s4874_s25 + $0x30] sm:$0xff] }
 0x311   : > { %v2185_v57 = vpop.permute.xlu1 %2184 }
 0x312   : > { %2262 = vst.msk [vmem:[#allocation2 + $0xf0] sm:$0xff] %vm237_vm4, %v2185_v57  ;;  %v2474_v38 = vpop.permute.xlu0 %2473 }
 0x313   : > { %2333 = vst.msk [vmem:[#allocation2 + $0xe9] sm:$0xff] %vm252_vm5, %v2297_v43  ;;  %2334 = vst.msk [vmem:[#allocation2 + $0xf1] sm:$0xff] %vm252_vm5, %v5906_v18  ;;  %v6200_v41 = vld [vmem:[#allocation2 + $0xd0] sm:$0xff]  ;;  %v6202_v45 = vld [vmem:[#allocation2 + $0xd8] sm:$0xff] }
 0x314   : > { %2550 = vst.msk [vmem:[#allocation2 + $0xe7] sm:$0xff] %vm288_vm7, %v2472_v63  ;;  %2551 = vst.msk [vmem:[#allocation2 + $0xef] sm:$0xff] %vm288_vm7, %v2474_v38  ;;  %4432 = vmatprep.mubr.msk.f32.mxu1 %vm864_vm12, %v6200_v41  ;;  %v3582_v63 = vld [vmem:[%s4874_s25 + $0x20] sm:$0xff] }
 0x315   : > { %4433 = vmatmul.mubr.msk.f32.gmra.mrb[30].mxu1 %vm864_vm12, %v6202_v45  ;;  %v2189_v4 = vpop.permute.xlu1 %2188 }
 0x316   : > { %2264 = vst.msk [vmem:[#allocation2 + $0x100] sm:$0xff] %vm237_vm4, %v2189_v4  ;;  %v2191_v18 = vpop.permute.xlu0 %2190 }
 0x317   : > { %2335 = vst.msk [vmem:[#allocation2 + $0xf9] sm:$0xff] %vm252_vm5, %v2299_v19 }
 0x318   : > { %2265 = vst.msk [vmem:[#allocation2 + $0x108] sm:$0xff] %vm237_vm4, %v2191_v18  ;;  %v3586_v18 = vld [vmem:[%s4874_s25 + $0x40] sm:$0xff] }
 0x319   : > { %2336 = vst.msk [vmem:[#allocation2 + $0x101] sm:$0xff] %vm252_vm5, %v5924_v36  ;;  %v4774_v10 = vpop.permute.xlu1 %4773 }
 0x31a   : > { %2552 = vst.msk [vmem:[#allocation2 + $0xf7] sm:$0xff] %vm288_vm7, %v2476_v55  ;;  %v4776_v47 = vunpack.i.h.bf16 %v4774_v10  ;;  %v4775_v60 = vunpack.i.l.bf16 %v4774_v10  ;;  %v2478_v17 = vpop.permute.xlu0 %2477 }
 0x31b   : > { %2553 = vst.msk [vmem:[#allocation2 + $0xff] sm:$0xff] %vm288_vm7, %v2478_v17  ;;  %v6220_v34 = vld [vmem:[#allocation2 + $0xe0] sm:$0xff]  ;;  %v6222_v25 = vld [vmem:[#allocation2 + $0xe8] sm:$0xff] }
 0x31c   : > { %2266 = vst.msk [vmem:[#allocation2 + $0x110] sm:$0xff] %vm237_vm4, %v4775_v60  ;;  %2267 = vst.msk [vmem:[#allocation2 + $0x118] sm:$0xff] %vm237_vm4, %v4776_v47  ;;  %4435 = vmatprep.mubr.msk.f32.mxu1 %vm864_vm12, %v6220_v34 }
 0x31d   : > { %2337 = vst.msk [vmem:[#allocation2 + $0x109] sm:$0xff] %vm252_vm5, %v2301_v52  ;;  %2338 = vst.msk [vmem:[#allocation2 + $0x111] sm:$0xff] %vm252_vm5, %v4806_v3  ;;  %4436 = vmatmul.mubr.msk.f32.gmra.mrb[32].mxu1 %vm864_vm12, %v6222_v25  ;;  %v4779_v56 = vpop.permute.xlu1 %4778 }
 0x31e   : > { %2339 = vst.msk [vmem:[#allocation2 + $0x119] sm:$0x7f] %vm256_vm6, %v4806_v3  ;;  %v4780_v36 = vunpack.i.l.bf16 %v4779_v56  ;;  %v2480_v49 = vpop.permute.xlu0 %2479  ;;  %v4781_v24 = vunpack.i.h.bf16 %v4779_v56  ;;  %v3588_v56 = vld [vmem:[%s4874_s25 + $0x50] sm:$0xff] }
 0x31f   : > { %2557 = vst.msk [vmem:[#allocation2 + $0x11f] sm:$0x1] %vm292_vm8, %v4806_v3 }
 0x320   : > { %2554 = vst.msk [vmem:[#allocation2 + $0x107] sm:$0xff] %vm288_vm7, %v2480_v49  ;;  %2555 = vst.msk [vmem:[#allocation2 + $0x10f] sm:$0xff] %vm288_vm7, %v4780_v36 }
 0x321   : > { %v6241_v16 = vld [vmem:[#allocation2 + $0xf0] sm:$0xff]  ;;  %v2416_v22 = vpop.permute.xlu1 %2415 }
 0x322   : > { %4438 = vmatprep.mubr.msk.f32.mxu1 %vm864_vm12, %v6241_v16  ;;  %v2125_v53 = vpop.permute.xlu0 %2124  ;;  %v6246_v11 = vld [vmem:[#allocation2 + $0xf8] sm:$0xff] }
 0x323   : > { %2232 = vst.msk [vmem:[#allocation2] sm:$0xff] %vm237_vm4, %v2125_v53  ;;  %4439 = vmatmul.mubr.msk.f32.gmra.mrb[34].mxu1 %vm864_vm12, %v6246_v11  ;;  %v3591_v53 = vld [vmem:[%s4874_s25 + $0x68] sm:$0xff] }
 0x324   : > { %2304 = vst.msk [vmem:[#allocation2 + $0x1] sm:$0xff] %vm252_vm5, %v4806_v3 }
 0x325   : > { %2340 = vst.msk [vmem:[#allocation2] sm:$0x1] %vm258_vm9, %v4806_v3  ;;  %v811_v37 = vpop.permute.xlu1 %810 }
 0x326   : > { %2521 = vst.msk [vmem:[#allocation2 - $0x1] sm:$0xfe] %vm286_vm11, %v4781_v24  ;;  %v2484_v30 = vpop.permute.xlu0 %2483 }
 0x327   : > { %2522 = vst.msk [vmem:[#allocation2 + $0x7] sm:$0xff] %vm288_vm7, %v2416_v22  ;;  %819 = vst.msk [vmem:[#allocation2 + $0x137] sm:$0xff] %vm288_vm7, %v811_v37  ;;  %v6258_v58 = vld [vmem:[#allocation2 + $0x100] sm:$0xff]  ;;  %v6263_v13 = vld [vmem:[#allocation2 + $0x108] sm:$0xff] }
 0x328   : > { %2556 = vst.msk [vmem:[#allocation2 + $0x117] sm:$0xff] %vm288_vm7, %v2484_v30  ;;  %4441 = vmatprep.mubr.msk.f32.mxu1 %vm864_vm12, %v6258_v58  ;;  %v3590_v37 = vld [vmem:[%s4874_s25 + $0x60] sm:$0xff] }
 0x329   : > { %4442 = vmatmul.mubr.msk.f32.gmra.mrb[36].mxu1 %vm864_vm12, %v6263_v13 }
 0x32e   : > { %v2558_v3 = vld [vmem:[#allocation2] sm:$0xff]  ;;  %v2559_v32 = vld [vmem:[#allocation2 + $0x8] sm:$0xff]  ;;  %v1510_v40 = vld [vmem:[#allocation2 + $0x130] sm:$0xff] }
 0x32f   : > { %4448 = vmatprep.mubr.msk.f32.mxu1 %vm864_vm12, %v2558_v3  ;;  %v1511_v28 = vld [vmem:[#allocation2 + $0x138] sm:$0xff]  ;;  %4389 = vmatprep.mubr.msk.f32.mxu0 %vm864_vm12, %v1510_v40  ;;  %v3185_v5 = vld [vmem:[#allocation2 + $0x110] sm:$0xff] }
 0x330   : > { %4449 = vmatmul.mubr.msk.f32.vlgmr.msra.gmra.mrb[6].mxu1 %vm864_vm12, %v2559_v32  ;;  %4390 = vmatmul.mubr.msk.f32.gmra.mrb[40].mxu0 %vm864_vm12, %v1511_v28  ;;  %v3593_v32 = vld [vmem:[%s4874_s25 + $0x78] sm:$0xff] }
 0x331   : > { %4583 = vmatpush3.bf16.msk.msra.mxu1 %vm4860_vm2, %v5969_v35  ;;  %4451 = vmatprep.mubr.msk.f32.mxu1 %vm864_vm12, %v5965_v29  ;;  %v3186_v29 = vld [vmem:[#allocation2 + $0x118] sm:$0xff] }
 0x334   : > { %4452 = vmatmul.mubr.msk.f32.gmra.mrb[8].mxu1 %vm864_vm12, %v5975_v44 }
 0x335   : > { %4454 = vmatprep.mubr.msk.f32.mxu1 %vm864_vm12, %v6002_v20 }
 0x338   : > { %4455 = vmatmul.mubr.msk.f32.gmra.mrb[10].mxu1 %vm864_vm12, %v6004_v48 }
 0x339   : > { %4457 = vmatprep.mubr.msk.f32.mxu1 %vm864_vm12, %v6020_v0 }
 0x33c   : > { %4458 = vmatmul.mubr.msk.f32.gmra.mrb[12].mxu1 %vm864_vm12, %v6022_v7 }
 0x33d   : > { %4460 = vmatprep.mubr.msk.f32.mxu1 %vm864_vm12, %v6038_v21 }
 0x340   : > { %4461 = vmatmul.mubr.msk.f32.gmra.mrb[14].mxu1 %vm864_vm12, %v6040_v39 }
 0x341   : > { %4463 = vmatprep.mubr.msk.f32.mxu1 %vm864_vm12, %v6056_v51 }
 0x344   : > { %4464 = vmatmul.mubr.msk.f32.gmra.mrb[16].mxu1 %vm864_vm12, %v6058_v15 }
 0x345   : > { %4466 = vmatprep.mubr.msk.f32.mxu1 %vm864_vm12, %v6074_v33 }
 0x348   : > { %4467 = vmatmul.mubr.msk.f32.gmra.mrb[18].mxu1 %vm864_vm12, %v6076_v50 }
 0x349   : > { %4469 = vmatprep.mubr.msk.f32.mxu1 %vm864_vm12, %v6092_v27 }
 0x34c   : > { %4470 = vmatmul.mubr.msk.f32.gmra.mrb[20].mxu1 %vm864_vm12, %v6094_v14 }
 0x34d   : > { %4472 = vmatprep.mubr.msk.f32.mxu1 %vm864_vm12, %v6110_v1 }
 0x350   : > { %4473 = vmatmul.mubr.msk.f32.gmra.mrb[22].mxu1 %vm864_vm12, %v6112_v59 }
 0x351   : > { %4475 = vmatprep.mubr.msk.f32.mxu1 %vm864_vm12, %v6128_v61 }
 0x354   : > { %4476 = vmatmul.mubr.msk.f32.gmra.mrb[24].mxu1 %vm864_vm12, %v6130_v12 }
 0x355   : > { %4478 = vmatprep.mubr.msk.f32.mxu1 %vm864_vm12, %v6146_v46 }
 0x358   : > { %4479 = vmatmul.mubr.msk.f32.gmra.mrb[26].mxu1 %vm864_vm12, %v6148_v9 }
 0x359   : > { %4481 = vmatprep.mubr.msk.f32.mxu1 %vm864_vm12, %v6164_v8 }
 0x35c   : > { %4482 = vmatmul.mubr.msk.f32.gmra.mrb[28].mxu1 %vm864_vm12, %v6166_v31 }
 0x35d   : > { %4484 = vmatprep.mubr.msk.f32.mxu1 %vm864_vm12, %v6182_v6 }
 0x360   : > { %4485 = vmatmul.mubr.msk.f32.gmra.mrb[30].mxu1 %vm864_vm12, %v6184_v42 }
 0x361   : > { %4487 = vmatprep.mubr.msk.f32.mxu1 %vm864_vm12, %v6200_v41 }
 0x364   : > { %4488 = vmatmul.mubr.msk.f32.gmra.mrb[32].mxu1 %vm864_vm12, %v6202_v45 }
 0x365   : > { %4490 = vmatprep.mubr.msk.f32.mxu1 %vm864_vm12, %v6220_v34 }
 0x368   : > { %4491 = vmatmul.mubr.msk.f32.gmra.mrb[34].mxu1 %vm864_vm12, %v6222_v25 }
 0x369   : > { %4493 = vmatprep.mubr.msk.f32.mxu1 %vm864_vm12, %v6241_v16 }
 0x36c   : > { %4494 = vmatmul.mubr.msk.f32.gmra.mrb[36].mxu1 %vm864_vm12, %v6246_v11 }
 0x36d   : > { %4500 = vmatprep.mubr.msk.f32.mxu1 %vm864_vm12, %v6002_v20 }
 0x370   : > { %4501 = vmatmul.mubr.msk.f32.vlgmr.msra.gmra.mrb[6].mxu1 %vm864_vm12, %v6004_v48  ;;  %v3579_v48 = vld [vmem:[%s4874_s25 + $0x8] sm:$0xff] }
 0x371   : > { %4503 = vmatprep.mubr.msk.f32.mxu1 %vm864_vm12, %v6020_v0 }
 0x374   : > { %4504 = vmatmul.mubr.msk.f32.gmra.mrb[8].mxu1 %vm864_vm12, %v6022_v7 }
 0x375   : > { %4506 = vmatprep.mubr.msk.f32.mxu1 %vm864_vm12, %v6038_v21  ;;  %v3578_v21 = vld [vmem:[%s4874_s25] sm:$0xff] }
 0x378   : > { %4507 = vmatmul.mubr.msk.f32.gmra.mrb[10].mxu1 %vm864_vm12, %v6040_v39 }
 0x379   : > { %4509 = vmatprep.mubr.msk.f32.mxu1 %vm864_vm12, %v6056_v51 }
 0x37c   : > { %4510 = vmatmul.mubr.msk.f32.gmra.mrb[12].mxu1 %vm864_vm12, %v6058_v15 }
 0x37d   : > { %4512 = vmatprep.mubr.msk.f32.mxu1 %vm864_vm12, %v6074_v33 }
 0x380   : > { %4513 = vmatmul.mubr.msk.f32.gmra.mrb[14].mxu1 %vm864_vm12, %v6076_v50  ;;  %v3581_v50 = vld [vmem:[%s4874_s25 + $0x18] sm:$0xff] }
 0x381   : > { %4515 = vmatprep.mubr.msk.f32.mxu1 %vm864_vm12, %v6092_v27 }
 0x384   : > { %4516 = vmatmul.mubr.msk.f32.gmra.mrb[16].mxu1 %vm864_vm12, %v6094_v14 }
 0x385   : > { %4518 = vmatprep.mubr.msk.f32.mxu1 %vm864_vm12, %v6110_v1  ;;  %v3580_v1 = vld [vmem:[%s4874_s25 + $0x10] sm:$0xff] }
 0x388   : > { %4519 = vmatmul.mubr.msk.f32.gmra.mrb[18].mxu1 %vm864_vm12, %v6112_v59 }
 0x389   : > { %4521 = vmatprep.mubr.msk.f32.mxu1 %vm864_vm12, %v6128_v61 }
 0x38c   : > { %4522 = vmatmul.mubr.msk.f32.gmra.mrb[20].mxu1 %vm864_vm12, %v6130_v12 }
 0x38d   : > { %4524 = vmatprep.mubr.msk.f32.mxu1 %vm864_vm12, %v6146_v46 }
 0x390   : > { %4525 = vmatmul.mubr.msk.f32.gmra.mrb[22].mxu1 %vm864_vm12, %v6148_v9  ;;  %v3583_v9 = vld [vmem:[%s4874_s25 + $0x28] sm:$0xff] }
 0x391   : > { %4527 = vmatprep.mubr.msk.f32.mxu1 %vm864_vm12, %v6164_v8 }
 0x394   : > { %4528 = vmatmul.mubr.msk.f32.gmra.mrb[24].mxu1 %vm864_vm12, %v6166_v31 }
 0x395   : > { %4530 = vmatprep.mubr.msk.f32.mxu1 %vm864_vm12, %v6182_v6  ;;  %v3585_v6 = vld [vmem:[%s4874_s25 + $0x38] sm:$0xff] }
 0x398   : > { %4531 = vmatmul.mubr.msk.f32.gmra.mrb[26].mxu1 %vm864_vm12, %v6184_v42 }
 0x399   : > { %4533 = vmatprep.mubr.msk.f32.mxu1 %vm864_vm12, %v6200_v41 }
 0x39c   : > { %4534 = vmatmul.mubr.msk.f32.gmra.mrb[28].mxu1 %vm864_vm12, %v6202_v45  ;;  %v3587_v45 = vld [vmem:[%s4874_s25 + $0x48] sm:$0xff] }
 0x39d   : > { %4536 = vmatprep.mubr.msk.f32.mxu1 %vm864_vm12, %v6220_v34  ;;  %v3589_v34 = vld [vmem:[%s4874_s25 + $0x58] sm:$0xff] }
 0x3a0   : > { %4537 = vmatmul.mubr.msk.f32.gmra.mrb[30].mxu1 %vm864_vm12, %v6222_v25 }
 0x3a1   : > { %4539 = vmatprep.mubr.msk.f32.mxu1 %vm864_vm12, %v6241_v16 }
 0x3a4   : > { %4540 = vmatmul.mubr.msk.f32.gmra.mrb[32].mxu1 %vm864_vm12, %v6246_v11 }
 0x3a5   : > { %4542 = vmatprep.mubr.msk.f32.mxu1 %vm864_vm12, %v6258_v58 }
 0x3a8   : > { %4543 = vmatmul.mubr.msk.f32.gmra.mrb[34].mxu1 %vm864_vm12, %v6263_v13 }
 0x3a9   : > { %4545 = vmatprep.mubr.msk.f32.mxu1 %vm864_vm12, %v3185_v5  ;;  %v3592_v5 = vld [vmem:[%s4874_s25 + $0x70] sm:$0xff] }
 0x3ac   : > { %4546 = vmatmul.mubr.msk.f32.gmra.mrb[36].mxu1 %vm864_vm12, %v3186_v29 }
 0x403   : > { %v4391_v35 = vpop.f32.mrb[40].mxu0 }
 0x404   : > { %v1862_v44 = vpop.f32.mrb[41].mxu0 }
 0x443   : > { %v4502_v20 = vpop.f32.mrb[6].mxu1 }
 0x444   : > { %v3547_v0 = vmax.f32 %v4502_v20, 0.0  ;;  %v3355_v7 = vpop.f32.mrb[7].mxu1 }
 0x445   : > { %v3546_v39 = vmax.f32 %v3355_v7, 0.0 }
 0x446   : > { %v3611_v51 = vadd.f32 %v3579_v48, %v3547_v0  ;;  %v3595_v48 = vld [vmem:[%s4874_s25 + $0x88] sm:$0xff] }
 0x447   : > { %v3610_v15 = vadd.f32 %v3578_v21, %v3546_v39  ;;  %v4505_v33 = vpop.f32.mrb[8].mxu1  ;;  %v3594_v21 = vld [vmem:[%s4874_s25 + $0x80] sm:$0xff] }
 0x448   : > { %3643 = vst.msk [vmem:[%s6403_s27 + $0x8] sm:$0xff] %vm252_vm5, %v3611_v51  ;;  %v3549_v27 = vmax.f32 %v4505_v33, 0.0  ;;  %v3365_v14 = vpop.f32.mrb[9].mxu1 }
 0x449   : > { %3642 = vst.msk [vmem:[%s6403_s27] sm:$0xff] %vm252_vm5, %v3610_v15  ;;  %v3548_v59 = vmax.f32 %v3365_v14, 0.0 }
 0x44a   : > { %v3613_v61 = vadd.f32 %v3581_v50, %v3549_v27  ;;  %v3597_v50 = vld [vmem:[%s4874_s25 + $0x98] sm:$0xff] }
 0x44b   : > { %v3612_v12 = vadd.f32 %v3580_v1, %v3548_v59  ;;  %v4508_v46 = vpop.f32.mrb[10].mxu1  ;;  %v3596_v1 = vld [vmem:[%s4874_s25 + $0x90] sm:$0xff] }
 0x44c   : > { %3645 = vst.msk [vmem:[%s6403_s27 + $0x18] sm:$0xff] %vm252_vm5, %v3613_v61  ;;  %v3551_v8 = vmax.f32 %v4508_v46, 0.0  ;;  %v3375_v31 = vpop.f32.mrb[11].mxu1 }
 0x44d   : > { %3644 = vst.msk [vmem:[%s6403_s27 + $0x10] sm:$0xff] %vm252_vm5, %v3612_v12  ;;  %v3550_v23 = vmax.f32 %v3375_v31, 0.0 }
 0x44e   : > { %v3615_v62 = vadd.f32 %v3583_v9, %v3551_v8  ;;  %v3599_v9 = vld [vmem:[%s4874_s25 + $0xa8] sm:$0xff] }
 0x44f   : > { %v3614_v2 = vadd.f32 %v3582_v63, %v3550_v23  ;;  %v4511_v54 = vpop.f32.mrb[12].mxu1  ;;  %v3598_v63 = vld [vmem:[%s4874_s25 + $0xa0] sm:$0xff] }
 0x450   : > { %3647 = vst.msk [vmem:[%s6403_s27 + $0x28] sm:$0xff] %vm252_vm5, %v3615_v62  ;;  %v3553_v42 = vmax.f32 %v4511_v54, 0.0  ;;  %v3385_v55 = vpop.f32.mrb[13].mxu1 }
 0x451   : > { %3646 = vst.msk [vmem:[%s6403_s27 + $0x20] sm:$0xff] %vm252_vm5, %v3614_v2  ;;  %v3552_v57 = vmax.f32 %v3385_v55, 0.0 }
 0x452   : > { %v3617_v43 = vadd.f32 %v3585_v6, %v3553_v42  ;;  %v3601_v6 = vld [vmem:[%s4874_s25 + $0xb8] sm:$0xff] }
 0x453   : > { %v3616_v38 = vadd.f32 %v3584_v26, %v3552_v57  ;;  %v4514_v41 = vpop.f32.mrb[14].mxu1  ;;  %v3600_v26 = vld [vmem:[%s4874_s25 + $0xb0] sm:$0xff] }
 0x454   : > { %3649 = vst.msk [vmem:[%s6403_s27 + $0x38] sm:$0xff] %vm252_vm5, %v3617_v43  ;;  %v3555_v4 = vmax.f32 %v4514_v41, 0.0  ;;  %v3395_v19 = vpop.f32.mrb[15].mxu1 }
 0x455   : > { %3648 = vst.msk [vmem:[%s6403_s27 + $0x30] sm:$0xff] %vm252_vm5, %v3616_v38  ;;  %v3554_v10 = vmax.f32 %v3395_v19, 0.0 }
 0x456   : > { %v3619_v47 = vadd.f32 %v3587_v45, %v3555_v4  ;;  %v3603_v45 = vld [vmem:[%s4874_s25 + $0xc8] sm:$0xff] }
 0x457   : > { %v3618_v60 = vadd.f32 %v3586_v18, %v3554_v10  ;;  %v4517_v17 = vpop.f32.mrb[16].mxu1  ;;  %v3602_v18 = vld [vmem:[%s4874_s25 + $0xc0] sm:$0xff] }
 0x458   : > { %3651 = vst.msk [vmem:[%s6403_s27 + $0x48] sm:$0xff] %vm252_vm5, %v3619_v47  ;;  %v3557_v25 = vmax.f32 %v4517_v17, 0.0  ;;  %v3405_v52 = vpop.f32.mrb[17].mxu1 }
 0x459   : > { %3650 = vst.msk [vmem:[%s6403_s27 + $0x40] sm:$0xff] %vm252_vm5, %v3618_v60  ;;  %v3556_v36 = vmax.f32 %v3405_v52, 0.0 }
 0x45a   : > { %v3621_v49 = vadd.f32 %v3589_v34, %v3557_v25  ;;  %v3605_v34 = vld [vmem:[%s4874_s25 + $0xd8] sm:$0xff] }
 0x45b   : > { %v3620_v16 = vadd.f32 %v3588_v56, %v3556_v36  ;;  %v4520_v22 = vpop.f32.mrb[18].mxu1  ;;  %v3604_v56 = vld [vmem:[%s4874_s25 + $0xd0] sm:$0xff] }
 0x45c   : > { %3653 = vst.msk [vmem:[%s6403_s27 + $0x58] sm:$0xff] %vm252_vm5, %v3621_v49  ;;  %v3559_v11 = vmax.f32 %v4520_v22, 0.0  ;;  %v3415_v24 = vpop.f32.mrb[19].mxu1 }
 0x45d   : > { %3652 = vst.msk [vmem:[%s6403_s27 + $0x50] sm:$0xff] %vm252_vm5, %v3620_v16  ;;  %v3558_v30 = vmax.f32 %v3415_v24, 0.0 }
 0x45e   : > { %v3623_v58 = vadd.f32 %v3591_v53, %v3559_v11  ;;  %v3607_v53 = vld [vmem:[%s4874_s25 + $0xe8] sm:$0xff] }
 0x45f   : > { %v3622_v13 = vadd.f32 %v3590_v37, %v3558_v30  ;;  %v4523_v3 = vpop.f32.mrb[20].mxu1  ;;  %v3606_v37 = vld [vmem:[%s4874_s25 + $0xe0] sm:$0xff] }
 0x460   : > { %3655 = vst.msk [vmem:[%s6403_s27 + $0x68] sm:$0xff] %vm252_vm5, %v3623_v58  ;;  %v3561_v40 = vmax.f32 %v4523_v3, 0.0  ;;  %v3425_v28 = vpop.f32.mrb[21].mxu1 }
 0x461   : > { %3654 = vst.msk [vmem:[%s6403_s27 + $0x60] sm:$0xff] %vm252_vm5, %v3622_v13  ;;  %v3560_v29 = vmax.f32 %v3425_v28, 0.0 }
 0x462   : > { %v3625_v35 = vadd.f32 %v3593_v32, %v3561_v40  ;;  %v3609_v32 = vld [vmem:[%s4874_s25 + $0xf8] sm:$0xff] }
 0x463   : > { %v3624_v44 = vadd.f32 %v3592_v5, %v3560_v29  ;;  %v4526_v20 = vpop.f32.mrb[22].mxu1  ;;  %v3608_v5 = vld [vmem:[%s4874_s25 + $0xf0] sm:$0xff] }
 0x464   : > { %3657 = vst.msk [vmem:[%s6403_s27 + $0x78] sm:$0xff] %vm252_vm5, %v3625_v35  ;;  %v3563_v0 = vmax.f32 %v4526_v20, 0.0  ;;  %v3435_v7 = vpop.f32.mrb[23].mxu1 }
 0x465   : > { %3656 = vst.msk [vmem:[%s6403_s27 + $0x70] sm:$0xff] %vm252_vm5, %v3624_v44  ;;  %v3562_v39 = vmax.f32 %v3435_v7, 0.0 }
 0x466   : > { %v3627_v51 = vadd.f32 %v3595_v48, %v3563_v0 }
 0x467   : > { %v3626_v15 = vadd.f32 %v3594_v21, %v3562_v39  ;;  %v4529_v33 = vpop.f32.mrb[24].mxu1 }
 0x468   : > { %3659 = vst.msk [vmem:[%s6403_s27 + $0x88] sm:$0xff] %vm252_vm5, %v3627_v51  ;;  %v3565_v27 = vmax.f32 %v4529_v33, 0.0  ;;  %v3445_v14 = vpop.f32.mrb[25].mxu1 }
 0x469   : > { %3658 = vst.msk [vmem:[%s6403_s27 + $0x80] sm:$0xff] %vm252_vm5, %v3626_v15  ;;  %v3564_v59 = vmax.f32 %v3445_v14, 0.0 }
 0x46a   : > { %v3629_v61 = vadd.f32 %v3597_v50, %v3565_v27 }
 0x46b   : > { %v3628_v12 = vadd.f32 %v3596_v1, %v3564_v59  ;;  %v4532_v46 = vpop.f32.mrb[26].mxu1 }
 0x46c   : > { %3661 = vst.msk [vmem:[%s6403_s27 + $0x98] sm:$0xff] %vm252_vm5, %v3629_v61  ;;  %v3567_v8 = vmax.f32 %v4532_v46, 0.0  ;;  %v3455_v31 = vpop.f32.mrb[27].mxu1 }
 0x46d   : > { %3660 = vst.msk [vmem:[%s6403_s27 + $0x90] sm:$0xff] %vm252_vm5, %v3628_v12  ;;  %v3566_v23 = vmax.f32 %v3455_v31, 0.0 }
 0x46e   : > { %v3631_v62 = vadd.f32 %v3599_v9, %v3567_v8 }
 0x46f   : > { %v3630_v2 = vadd.f32 %v3598_v63, %v3566_v23  ;;  %v4535_v54 = vpop.f32.mrb[28].mxu1 }
 0x470   : > { %3663 = vst.msk [vmem:[%s6403_s27 + $0xa8] sm:$0xff] %vm252_vm5, %v3631_v62  ;;  %v3569_v42 = vmax.f32 %v4535_v54, 0.0  ;;  %v3465_v55 = vpop.f32.mrb[29].mxu1 }
 0x471   : > { %3662 = vst.msk [vmem:[%s6403_s27 + $0xa0] sm:$0xff] %vm252_vm5, %v3630_v2  ;;  %v3568_v57 = vmax.f32 %v3465_v55, 0.0 }
 0x472   : > { %v3633_v43 = vadd.f32 %v3601_v6, %v3569_v42 }
 0x473   : > { %v3632_v38 = vadd.f32 %v3600_v26, %v3568_v57  ;;  %v4538_v41 = vpop.f32.mrb[30].mxu1 }
 0x474   : > { %3665 = vst.msk [vmem:[%s6403_s27 + $0xb8] sm:$0xff] %vm252_vm5, %v3633_v43  ;;  %v3571_v4 = vmax.f32 %v4538_v41, 0.0  ;;  %v3475_v19 = vpop.f32.mrb[31].mxu1 }
 0x475   : > { %3664 = vst.msk [vmem:[%s6403_s27 + $0xb0] sm:$0xff] %vm252_vm5, %v3632_v38  ;;  %v3570_v10 = vmax.f32 %v3475_v19, 0.0 }
 0x476   : > { %v3635_v47 = vadd.f32 %v3603_v45, %v3571_v4 }
 0x477   : > { %v3634_v60 = vadd.f32 %v3602_v18, %v3570_v10  ;;  %v4541_v17 = vpop.f32.mrb[32].mxu1 }
 0x478   : > { %3667 = vst.msk [vmem:[%s6403_s27 + $0xc8] sm:$0xff] %vm252_vm5, %v3635_v47  ;;  %v3573_v25 = vmax.f32 %v4541_v17, 0.0  ;;  %v3485_v52 = vpop.f32.mrb[33].mxu1 }
 0x479   : > { %3666 = vst.msk [vmem:[%s6403_s27 + $0xc0] sm:$0xff] %vm252_vm5, %v3634_v60  ;;  %v3572_v36 = vmax.f32 %v3485_v52, 0.0 }
 0x47a   : > { %v3637_v49 = vadd.f32 %v3605_v34, %v3573_v25 }
 0x47b   : > { %v3636_v16 = vadd.f32 %v3604_v56, %v3572_v36  ;;  %v4544_v22 = vpop.f32.mrb[34].mxu1 }
 0x47c   : > { %3669 = vst.msk [vmem:[%s6403_s27 + $0xd8] sm:$0xff] %vm252_vm5, %v3637_v49  ;;  %v3575_v11 = vmax.f32 %v4544_v22, 0.0  ;;  %v3495_v24 = vpop.f32.mrb[35].mxu1 }
 0x47d   : > { %3668 = vst.msk [vmem:[%s6403_s27 + $0xd0] sm:$0xff] %vm252_vm5, %v3636_v16  ;;  %v3574_v30 = vmax.f32 %v3495_v24, 0.0 }
 0x47e   : > { %v3639_v58 = vadd.f32 %v3607_v53, %v3575_v11 }
 0x47f   : > { %v3638_v13 = vadd.f32 %v3606_v37, %v3574_v30  ;;  %v4547_v3 = vpop.f32.mrb[36].mxu1 }
 0x480   : > { %3671 = vst.msk [vmem:[%s6403_s27 + $0xe8] sm:$0xff] %vm252_vm5, %v3639_v58  ;;  %v3577_v40 = vmax.f32 %v4547_v3, 0.0  ;;  %v3505_v28 = vpop.f32.mrb[37].mxu1 }
 0x481   : > { %3670 = vst.msk [vmem:[%s6403_s27 + $0xe0] sm:$0xff] %vm252_vm5, %v3638_v13  ;;  %v3576_v29 = vmax.f32 %v3505_v28, 0.0 }
 0x482   : > { %v3641_v35 = vadd.f32 %v3609_v32, %v3577_v40 }
 0x483   : > { %v3640_v44 = vadd.f32 %v3608_v5, %v3576_v29 }
 0x484   : > { %3673 = vst.msk [vmem:[%s6403_s27 + $0xf8] sm:$0xff] %vm252_vm5, %v3641_v35 }
 0x485   : > { %3672 = vst.msk [vmem:[%s6403_s27 + $0xf0] sm:$0xff] %vm252_vm5, %v3640_v44 }
 0x486 PF: > { %s13_s14 = sadd.s32 1, %s4804_s14   ;;  %s6514_s12 = smov %s4800_s13 }
 0x487   : > { %p10_p5 = scmp.ge.s32.totalorder %s13_s14, 4   ;;  %s6515_s13 = smov %s6517_s15 }
 0x489   :  { %12 = sbr.rel (!%p10_p5) target bundleno = 2 (0x2), region = 69 }

</bundles_post_ra>
